<compile_context>
chip_gen: v7x
topology: tpu7x:2x2x1
jax: 0.10.0
libtpu: 0.0.40
codegen_flags: <defaults>
</compile_context>

<pallas_src>
import jax
import jax.numpy as jnp
from jax.experimental import pallas as pl
from jax.experimental.pallas import tpu as pltpu


# ---------------------------------------------------------------------------
# small helpers
# ---------------------------------------------------------------------------
def _round_up(x, m):
    return ((x + m - 1) // m) * m


def _pick_time_chunk(T):
    for tc in (32, 16, 8, 4, 2, 1):
        if T % tc == 0:
            return tc
    return 1


def _pick_row_tile(M):
    for tm in (1024, 512, 256, 128, 64, 32, 16, 8):
        if M % tm == 0:
            return tm
    return M


def _pad_gate_cols(w, H, Hp):
    """(..., 4*H) -> (..., 4*Hp): zero-pad each of the 4 gate blocks independently."""
    if H == Hp:
        return w
    lead = w.shape[:-1]
    w4 = w.reshape(*lead, 4, H)
    w4 = jnp.pad(w4, [(0, 0)] * len(lead) + [(0, 0), (0, Hp - H)])
    return w4.reshape(*lead, 4 * Hp)


# ---------------------------------------------------------------------------
# Kernel 1: hoisted input projection (both directions), grid = (2, M // tm)
#   out[d, rows] = x[rows] @ W_ih[d] + (b_ih[d] + b_hh[d])
# ---------------------------------------------------------------------------
def _proj_kernel(x_ref, w_ref, b_ref, o_ref):
    o_ref[...] = (
        jnp.dot(x_ref[...], w_ref[...], preferred_element_type=jnp.float32)
        + b_ref[...]
    )


def input_projection(x2d, w_ih, b_gates):
    """x2d: (M, nIn) bf16; w_ih: (2, nIn, G) bf16; b_gates: (2, 1, G) f32 -> (2, M, G) f32."""
    M, nIn = x2d.shape
    G = w_ih.shape[-1]
    tm = _pick_row_tile(M)
    return pl.pallas_call(
        _proj_kernel,
        out_shape=jax.ShapeDtypeStruct((2, M, G), jnp.float32),
        grid_spec=pltpu.PrefetchScalarGridSpec(
            num_scalar_prefetch=0,
            grid=(2, M // tm),
            in_specs=[
                pl.BlockSpec((tm, nIn), lambda d, i: (i, 0)),
                pl.BlockSpec((None, nIn, G), lambda d, i: (d, 0, 0)),
                pl.BlockSpec((None, 1, G), lambda d, i: (d, 0, 0)),
            ],
            out_specs=pl.BlockSpec((None, tm, G), lambda d, i: (d, i, 0)),
        ),
        compiler_params=pltpu.CompilerParams(
            dimension_semantics=("parallel", "parallel")
        ),
    )(x2d, w_ih, b_gates)


# ---------------------------------------------------------------------------
# Kernel 2: fused bidirectional LSTM recurrence, grid = (2 directions, T // Tc chunks)
#   gates = xw_t + h @ W_hh ; PyTorch gate order (i, f, g, o).
#   h, c carried in VMEM scratch; backward direction walks time in reverse via index math.
# ---------------------------------------------------------------------------
def _bilstm_kernel(xw_ref, w_hh_ref, out_ref, h_sc, c_sc):
    d = pl.program_id(0)          # 0 = forward, 1 = backward

    @pl.when(pl.program_id(1) == 0)
    def _():
        h_sc[...] = jnp.zeros_like(h_sc)
        c_sc[...] = jnp.zeros_like(c_sc)

    Tc = out_ref.shape[0]
    Hp = out_ref.shape[-1]

    def step(s, carry):
        h, c = carry                              # f32 (b, Hp)
        # fwd: lt = s ; bwd: lt = Tc - 1 - s   (branch-free)
        lt = s + d * (Tc - 1 - 2 * s)
        w_hh = w_hh_ref[...]                      # (Hp, 4Hp) bf16, resident block
        gates = xw_ref[lt] + jnp.dot(
            h.astype(w_hh.dtype), w_hh, preferred_element_type=jnp.float32
        )                                         # (b, 4Hp) f32, 128-aligned gate slices
        i_g = jax.nn.sigmoid(gates[:, 0 * Hp:1 * Hp])
        f_g = jax.nn.sigmoid(gates[:, 1 * Hp:2 * Hp])
        g_g = jnp.tanh(gates[:, 2 * Hp:3 * Hp])
        o_g = jax.nn.sigmoid(gates[:, 3 * Hp:4 * Hp])
        c_new = f_g * c + i_g * g_g
        h_new = o_g * jnp.tanh(c_new)
        out_ref[lt] = h_new
        return (h_new, c_new)

    h_fin, c_fin = jax.lax.fori_loop(
        0, Tc, step, (h_sc[...], c_sc[...]), unroll=True
    )
    h_sc[...] = h_fin
    c_sc[...] = c_fin


def bilstm_recurrence(xw, w_hh):
    """xw: (2, T, b, 4Hp) f32; w_hh: (2, Hp, 4Hp) bf16 -> stacked h: (2, T, b, Hp) f32."""
    _, T, b, G = xw.shape
    Hp = w_hh.shape[1]
    Tc = _pick_time_chunk(T)
    nT = T // Tc

    def time_map(d, t):
        # fwd walks chunks 0..nT-1 ; bwd walks nT-1..0 (branch-free arithmetic)
        tb = t + d * (nT - 1 - 2 * t)
        return (d, tb, 0, 0)

    return pl.pallas_call(
        _bilstm_kernel,
        out_shape=jax.ShapeDtypeStruct((2, T, b, Hp), jnp.float32),
        grid_spec=pltpu.PrefetchScalarGridSpec(
            num_scalar_prefetch=0,
            grid=(2, nT),
            in_specs=[
                pl.BlockSpec((None, Tc, b, G), time_map),
                pl.BlockSpec((None, Hp, G), lambda d, t: (d, 0, 0)),
            ],
            out_specs=pl.BlockSpec((None, Tc, b, Hp), time_map),
            scratch_shapes=[
                pltpu.VMEM((b, Hp), jnp.float32),   # h carry
                pltpu.VMEM((b, Hp), jnp.float32),   # c carry
            ],
        ),
        compiler_params=pltpu.CompilerParams(
            # direction axis is parallel (2 TCs on v7x); time recurrence is sequential.
            dimension_semantics=("parallel", "arbitrary")
        ),
    )(xw, w_hh)


# ---------------------------------------------------------------------------
# Kernel 3: embedding Linear(2H, nOut) without concatenation:
#   out = h_fwd @ W[:H] + h_bwd @ W[H:] + b,  tiled over rows (M // tm).
# ---------------------------------------------------------------------------
def _emb_kernel(h_ref, w_ref, b_ref, o_ref):
    cd = w_ref.dtype
    o_ref[...] = (
        jnp.dot(h_ref[0].astype(cd), w_ref[0], preferred_element_type=jnp.float32)
        + jnp.dot(h_ref[1].astype(cd), w_ref[1], preferred_element_type=jnp.float32)
        + b_ref[...]
    )


def embedding(h2, w_emb, b_emb):
    """h2: (2, M, Hp) f32; w_emb: (2, Hp, Np) bf16; b_emb: (1, Np) f32 -> (M, Np) f32."""
    _, M, Hp = h2.shape
    Np = w_emb.shape[-1]
    tm = _pick_row_tile(M)
    return pl.pallas_call(
        _emb_kernel,
        out_shape=jax.ShapeDtypeStruct((M, Np), jnp.float32),
        grid_spec=pltpu.PrefetchScalarGridSpec(
            num_scalar_prefetch=0,
            grid=(M // tm,),
            in_specs=[
                pl.BlockSpec((2, tm, Hp), lambda i: (0, i, 0)),
                pl.BlockSpec((2, Hp, Np), lambda i: (0, 0, 0)),
                pl.BlockSpec((1, Np), lambda i: (0, 0)),
            ],
            out_specs=pl.BlockSpec((tm, Np), lambda i: (i, 0)),
        ),
        compiler_params=pltpu.CompilerParams(dimension_semantics=("parallel",)),
    )(h2, w_emb, b_emb)


# ---------------------------------------------------------------------------
# Parameter preparation: pad to lane/sublane-friendly sizes, stack directions, cast to bf16.
# ---------------------------------------------------------------------------
def prepare_params(params, H, nOut):
    Hp = _round_up(H, 128)
    Np = _round_up(nOut, 128)

    def pad_ih(w):                      # (nIn, 4H) -> (nIn, 4Hp)
        return _pad_gate_cols(w, H, Hp)

    def pad_hh(w):                      # (H, 4H) -> (Hp, 4Hp)
        w = _pad_gate_cols(w, H, Hp)
        return jnp.pad(w, ((0, Hp - H), (0, 0)))

    w_ih = jnp.stack([pad_ih(params["w_ih_f"]), pad_ih(params["w_ih_b"])]).astype(jnp.bfloat16)
    w_hh = jnp.stack([pad_hh(params["w_hh_f"]), pad_hh(params["w_hh_b"])]).astype(jnp.bfloat16)
    b_gates = jnp.stack([_pad_gate_cols(params["b_f"], H, Hp),
                         _pad_gate_cols(params["b_b"], H, Hp)])            # (2, 1, 4Hp) f32

    # rows [0:H] of the embedding weight multiply the fwd half, [H:2H] the bwd half.
    w_emb = params["w_emb"].reshape(2, H, nOut)
    w_emb = jnp.pad(w_emb, ((0, 0), (0, Hp - H), (0, Np - nOut))).astype(jnp.bfloat16)
    b_emb = jnp.pad(params["b_emb"], ((0, 0), (0, Np - nOut)))             # (1, Np) f32

    return {"w_ih": w_ih, "w_hh": w_hh, "b_gates": b_gates,
            "w_emb": w_emb, "b_emb": b_emb, "Hp": Hp, "Np": Np}


# ---------------------------------------------------------------------------
# Full module forward.
# ---------------------------------------------------------------------------
def bidirectional_lstm(x, params):
    """x: (T, b, nIn) float32 -> (T, b, nOut) float32."""
    T, b, nIn = x.shape
    H = params["w_hh_f"].shape[0]
    nOut = params["w_emb"].shape[1]
    prep = prepare_params(params, H, nOut)
    Hp, Np = prep["Hp"], prep["Np"]

    # pad batch to a multiple of 8 sublanes (exact: padded rows are independent and sliced off)
    b_pad = _round_up(b, 8)
    if b_pad != b:
        x = jnp.pad(x, ((0, 0), (0, b_pad - b), (0, 0)))
    M = T * b_pad

    # 1) hoisted input projection (one big matmul per direction), bias folded in
    x2d = x.reshape(M, nIn).astype(jnp.bfloat16)
    xw = input_projection(x2d, prep["w_ih"], prep["b_gates"])       # (2, M, 4Hp) f32
    xw = xw.reshape(2, T, b_pad, 4 * Hp)                            # free reshape

    # 2) fused fwd/bwd recurrence (no flips, no concat)
    h = bilstm_recurrence(xw, prep["w_hh"])                         # (2, T, b_pad, Hp) f32

    # 3) embedding Linear over the stacked slab
    out = embedding(h.reshape(2, M, Hp), prep["w_emb"], prep["b_emb"])   # (M, Np) f32

    # NOTE: on v7x at production sizes, cap VMEM via CompilerParams(vmem_limit_bytes=...) and
    # consider single-buffering the resident weight blocks.
    return out.reshape(T, b_pad, Np)[:, :b, :nOut]                  # (T, b, nOut)


def init_params(key, nIn, nHidden, nOut):
    """Deterministic synthetic parameters (PyTorch-style uniform(-1/sqrt(H), 1/sqrt(H)))."""
    ks = jax.random.split(key, 10)
    s = 1.0 / jnp.sqrt(nHidden)

    def u(k, shape):
        return jax.random.uniform(k, shape, jnp.float32, -s, s)

    H4 = 4 * nHidden
    return {
        # weights stored pre-transposed: x @ W_ih, h @ W_hh ; PyTorch gate order (i, f, g, o)
        "w_ih_f": u(ks[0], (nIn, H4)),
        "w_hh_f": u(ks[1], (nHidden, H4)),
        "b_f": u(ks[2], (1, H4)) + u(ks[3], (1, H4)),   # b_ih + b_hh folded
        "w_ih_b": u(ks[4], (nIn, H4)),
        "w_hh_b": u(ks[5], (nHidden, H4)),
        "b_b": u(ks[6], (1, H4)) + u(ks[7], (1, H4)),
        "w_emb": u(ks[8], (2 * nHidden, nOut)),
        "b_emb": u(ks[9], (1, nOut)),
    }


if __name__ == "__main__":
    T, b, nIn, nHidden, nOut = 8, 2, 16, 32, 16

    key = jax.random.PRNGKey(0)
    k_x, k_p = jax.random.split(key)
    x = jax.random.normal(k_x, (T, b, nIn), jnp.float32)
    params = init_params(k_p, nIn, nHidden, nOut)

    out = jax.block_until_ready(jax.jit(bidirectional_lstm)(x, params))
    assert out.shape == (T, b, nOut), out.shape
    assert out.dtype == jnp.float32
    assert bool(jnp.all(jnp.isfinite(out)))
    print("KERNEL_OK")
</pallas_src>

<mosaic_0001>
module attributes {stable_mosaic.version = 11 : i64} {
  func.func @_proj_kernel(%arg0: i32, %arg1: i32, %arg2: memref<64x16xbf16, #tpu.memory_space<vmem>>, %arg3: memref<1x16x512xbf16, #tpu.memory_space<vmem>>, %arg4: memref<1x1x512xf32, #tpu.memory_space<vmem>>, %arg5: memref<1x64x512xf32, #tpu.memory_space<vmem>>) attributes {dimension_semantics = [#tpu.dimension_semantics<parallel>, #tpu.dimension_semantics<parallel>], iteration_bounds = array<i64: 2, 1>, scalar_prefetch = 0 : i64, scratch_operands = 0 : i64, tpu.core_type = #tpu.core_type<tc>, window_params = [{transform_indices = @transform_0, window_bounds = array<i64: 64, 16>}, {transform_indices = @transform_1, window_bounds = array<i64: 1, 16, 512>}, {transform_indices = @transform_2, window_bounds = array<i64: 1, 1, 512>}, {transform_indices = @transform_3, window_bounds = array<i64: 1, 64, 512>}]} {
    %c0 = arith.constant 0 : index
    %c0_0 = arith.constant 0 : index
    %0 = vector.load %arg2[%c0, %c0_0] : memref<64x16xbf16, #tpu.memory_space<vmem>>, vector<64x16xbf16>
    %c0_1 = arith.constant 0 : index
    %c0_2 = arith.constant 0 : index
    %c0_3 = arith.constant 0 : index
    %1 = vector.load %arg3[%c0_1, %c0_2, %c0_3] : memref<1x16x512xbf16, #tpu.memory_space<vmem>>, vector<1x16x512xbf16>
    %2 = vector.shape_cast %1 : vector<1x16x512xbf16> to vector<16x512xbf16>
    %cst = arith.constant dense<0.000000e+00> : vector<64x512xf32>
    %3 = tpu.matmul %0, %2, %cst {dimension_numbers = #tpu.dot_dimension_numbers<[1], [0], [0], [1], [0, 0, 1, 1], [], []>} : vector<64x16xbf16>, vector<16x512xbf16>, vector<64x512xf32> -> vector<64x512xf32>
    %c0_4 = arith.constant 0 : index
    %c0_5 = arith.constant 0 : index
    %c0_6 = arith.constant 0 : index
    %4 = vector.load %arg4[%c0_4, %c0_5, %c0_6] : memref<1x1x512xf32, #tpu.memory_space<vmem>>, vector<1x1x512xf32>
    %5 = vector.shape_cast %4 : vector<1x1x512xf32> to vector<1x512xf32>
    %6 = vector.broadcast %5 : vector<1x512xf32> to vector<64x512xf32>
    %7 = arith.addf %3, %6 : vector<64x512xf32>
    %c0_7 = arith.constant 0 : index
    %c0_8 = arith.constant 0 : index
    %c0_9 = arith.constant 0 : index
    %8 = vector.load %arg5[%c0_7, %c0_8, %c0_9] : memref<1x64x512xf32, #tpu.memory_space<vmem>>, vector<1x64x512xf32>
    %9 = vector.shape_cast %8 : vector<1x64x512xf32> to vector<64x512xf32>
    %10 = vector.shape_cast %7 : vector<64x512xf32> to vector<1x64x512xf32>
    tpu.vector_store %arg5[%c0_7, %c0_8, %c0_9], %10 {strides = array<i32>} : memref<1x64x512xf32, #tpu.memory_space<vmem>>, vector<1x64x512xf32>,
    return
  }
  func.func @transform_0(%arg0: i32, %arg1: i32) -> (i32, i32) {
    %c0_i32 = arith.constant 0 : i32
    %c0_i32_0 = arith.constant 0 : i32
    return %arg1, %c0_i32 : i32, i32
  }
  func.func @transform_1(%arg0: i32, %arg1: i32) -> (i32, i32, i32) {
    %c0_i32 = arith.constant 0 : i32
    %c0_i32_0 = arith.constant 0 : i32
    %c0_i32_1 = arith.constant 0 : i32
    return %arg0, %c0_i32, %c0_i32_0 : i32, i32, i32
  }
  func.func @transform_2(%arg0: i32, %arg1: i32) -> (i32, i32, i32) {
    %c0_i32 = arith.constant 0 : i32
    %c0_i32_0 = arith.constant 0 : i32
    %c0_i32_1 = arith.constant 0 : i32
    return %arg0, %c0_i32, %c0_i32_0 : i32, i32, i32
  }
  func.func @transform_3(%arg0: i32, %arg1: i32) -> (i32, i32, i32) {
    %c0_i32 = arith.constant 0 : i32
    %c0_i32_0 = arith.constant 0 : i32
    return %arg0, %arg1, %c0_i32 : i32, i32, i32
  }
}

module attributes {stable_mosaic.version = 11 : i64} {
  func.func @_emb_kernel(%arg0: i32, %arg1: memref<2x64x128xf32, #tpu.memory_space<vmem>>, %arg2: memref<2x128x128xbf16, #tpu.memory_space<vmem>>, %arg3: memref<1x128xf32, #tpu.memory_space<vmem>>, %arg4: memref<64x128xf32, #tpu.memory_space<vmem>>) attributes {dimension_semantics = [#tpu.dimension_semantics<parallel>], iteration_bounds = array<i64: 1>, scalar_prefetch = 0 : i64, scratch_operands = 0 : i64, tpu.core_type = #tpu.core_type<tc>, window_params = [{transform_indices = @transform_0, window_bounds = array<i64: 2, 64, 128>}, {pipeline_mode = #tpu.pipeline_mode<synchronous>, transform_indices = @transform_1, window_bounds = array<i64: 2, 128, 128>}, {pipeline_mode = #tpu.pipeline_mode<synchronous>, transform_indices = @transform_2, window_bounds = array<i64: 1, 128>}, {transform_indices = @transform_3, window_bounds = array<i64: 64, 128>}]} {
    %c0 = arith.constant 0 : index
    %c0_0 = arith.constant 0 : index
    %c0_1 = arith.constant 0 : index
    %0 = vector.load %arg1[%c0, %c0_0, %c0_1] : memref<2x64x128xf32, #tpu.memory_space<vmem>>, vector<1x64x128xf32>
    %1 = vector.shape_cast %0 : vector<1x64x128xf32> to vector<64x128xf32>
    %2 = arith.truncf %1 : vector<64x128xf32> to vector<64x128xbf16>
    %c0_2 = arith.constant 0 : index
    %c0_3 = arith.constant 0 : index
    %c0_4 = arith.constant 0 : index
    %3 = vector.load %arg2[%c0_2, %c0_3, %c0_4] : memref<2x128x128xbf16, #tpu.memory_space<vmem>>, vector<1x128x128xbf16>
    %4 = vector.shape_cast %3 : vector<1x128x128xbf16> to vector<128x128xbf16>
    %cst = arith.constant dense<0.000000e+00> : vector<64x128xf32>
    %5 = tpu.matmul %2, %4, %cst {dimension_numbers = #tpu.dot_dimension_numbers<[1], [0], [0], [1], [0, 0, 1, 1], [], []>} : vector<64x128xbf16>, vector<128x128xbf16>, vector<64x128xf32> -> vector<64x128xf32>
    %c1 = arith.constant 1 : index
    %c0_5 = arith.constant 0 : index
    %c0_6 = arith.constant 0 : index
    %6 = vector.load %arg1[%c1, %c0_5, %c0_6] : memref<2x64x128xf32, #tpu.memory_space<vmem>>, vector<1x64x128xf32>
    %7 = vector.shape_cast %6 : vector<1x64x128xf32> to vector<64x128xf32>
    %8 = arith.truncf %7 : vector<64x128xf32> to vector<64x128xbf16>
    %c1_7 = arith.constant 1 : index
    %c0_8 = arith.constant 0 : index
    %c0_9 = arith.constant 0 : index
    %9 = vector.load %arg2[%c1_7, %c0_8, %c0_9] : memref<2x128x128xbf16, #tpu.memory_space<vmem>>, vector<1x128x128xbf16>
    %10 = vector.shape_cast %9 : vector<1x128x128xbf16> to vector<128x128xbf16>
    %cst_10 = arith.constant dense<0.000000e+00> : vector<64x128xf32>
    %11 = tpu.matmul %8, %10, %cst_10 {dimension_numbers = #tpu.dot_dimension_numbers<[1], [0], [0], [1], [0, 0, 1, 1], [], []>} : vector<64x128xbf16>, vector<128x128xbf16>, vector<64x128xf32> -> vector<64x128xf32>
    %12 = arith.addf %5, %11 : vector<64x128xf32>
    %c0_11 = arith.constant 0 : index
    %c0_12 = arith.constant 0 : index
    %13 = vector.load %arg3[%c0_11, %c0_12] : memref<1x128xf32, #tpu.memory_space<vmem>>, vector<1x128xf32>
    %14 = vector.broadcast %13 : vector<1x128xf32> to vector<64x128xf32>
    %15 = arith.addf %12, %14 : vector<64x128xf32>
    %c0_13 = arith.constant 0 : index
    %c0_14 = arith.constant 0 : index
    %16 = vector.load %arg4[%c0_13, %c0_14] : memref<64x128xf32, #tpu.memory_space<vmem>>, vector<64x128xf32>
    tpu.vector_store %arg4[%c0_13, %c0_14], %15 {strides = array<i32>} : memref<64x128xf32, #tpu.memory_space<vmem>>, vector<64x128xf32>,
    return
  }
  func.func @transform_0(%arg0: i32) -> (i32, i32, i32) {
    %c0_i32 = arith.constant 0 : i32
    %c0_i32_0 = arith.constant 0 : i32
    %c0_i32_1 = arith.constant 0 : i32
    return %c0_i32, %arg0, %c0_i32_0 : i32, i32, i32
  }
  func.func @transform_1(%arg0: i32) -> (i32, i32, i32) {
    %c0_i32 = arith.constant 0 : i32
    %c0_i32_0 = arith.constant 0 : i32
    %c0_i32_1 = arith.constant 0 : i32
    %c0_i32_2 = arith.constant 0 : i32
    return %c0_i32, %c0_i32_0, %c0_i32_1 : i32, i32, i32
  }
  func.func @transform_2(%arg0: i32) -> (i32, i32) {
    %c0_i32 = arith.constant 0 : i32
    %c0_i32_0 = arith.constant 0 : i32
    %c0_i32_1 = arith.constant 0 : i32
    return %c0_i32, %c0_i32_0 : i32, i32
  }
  func.func @transform_3(%arg0: i32) -> (i32, i32) {
    %c0_i32 = arith.constant 0 : i32
    %c0_i32_0 = arith.constant 0 : i32
    return %arg0, %c0_i32 : i32, i32
  }
}

module attributes {stable_mosaic.version = 11 : i64} {
  func.func @_bilstm_kernel(%arg0: i32, %arg1: i32, %arg2: memref<1x8x8x512xf32, #tpu.memory_space<vmem>>, %arg3: memref<1x128x512xbf16, #tpu.memory_space<vmem>>, %arg4: memref<1x8x8x128xf32, #tpu.memory_space<vmem>>, %arg5: memref<8x128xf32, #tpu.memory_space<vmem>>, %arg6: memref<8x128xf32, #tpu.memory_space<vmem>>) attributes {dimension_semantics = [#tpu.dimension_semantics<parallel>, #tpu.dimension_semantics<arbitrary>], iteration_bounds = array<i64: 2, 1>, scalar_prefetch = 0 : i64, scratch_operands = 2 : i64, tpu.core_type = #tpu.core_type<tc>, window_params = [{transform_indices = @transform_0, window_bounds = array<i64: 1, 8, 8, 512>}, {transform_indices = @transform_1, window_bounds = array<i64: 1, 128, 512>}, {transform_indices = @transform_2, window_bounds = array<i64: 1, 8, 8, 128>}]} {
    %c0_i32 = arith.constant 0 : i32
    %0 = arith.cmpi eq, %arg1, %c0_i32 : i32
    %1 = arith.extui %0 : i1 to i32
    %c0_i32_0 = arith.constant 0 : i32
    %2 = arith.cmpi ne, %1, %c0_i32_0 : i32
    scf.if %2 {
      %cst_128 = arith.constant 0.000000e+00 : f32
      %335 = vector.broadcast %cst_128 : f32 to vector<8x128xf32>
      %c0_129 = arith.constant 0 : index
      %c0_130 = arith.constant 0 : index
      %336 = vector.load %arg5[%c0_129, %c0_130] : memref<8x128xf32, #tpu.memory_space<vmem>>, vector<8x128xf32>
      tpu.vector_store %arg5[%c0_129, %c0_130], %335 {strides = array<i32>} : memref<8x128xf32, #tpu.memory_space<vmem>>, vector<8x128xf32>,
      %cst_131 = arith.constant 0.000000e+00 : f32
      %337 = vector.broadcast %cst_131 : f32 to vector<8x128xf32>
      %c0_132 = arith.constant 0 : index
      %c0_133 = arith.constant 0 : index
      %338 = vector.load %arg6[%c0_132, %c0_133] : memref<8x128xf32, #tpu.memory_space<vmem>>, vector<8x128xf32>
      tpu.vector_store %arg6[%c0_132, %c0_133], %337 {strides = array<i32>} : memref<8x128xf32, #tpu.memory_space<vmem>>, vector<8x128xf32>,
    } else {
    }
    %c0 = arith.constant 0 : index
    %c0_1 = arith.constant 0 : index
    %3 = vector.load %arg5[%c0, %c0_1] : memref<8x128xf32, #tpu.memory_space<vmem>>, vector<8x128xf32>
    %c0_2 = arith.constant 0 : index
    %c0_3 = arith.constant 0 : index
    %4 = vector.load %arg6[%c0_2, %c0_3] : memref<8x128xf32, #tpu.memory_space<vmem>>, vector<8x128xf32>
    %c0_i32_4 = arith.constant 0 : i32
    %c2_i32 = arith.constant 2 : i32
    %5 = arith.muli %c2_i32, %c0_i32_4 : i32
    %c7_i32 = arith.constant 7 : i32
    %6 = arith.subi %c7_i32, %5 : i32
    %7 = arith.muli %arg0, %6 : i32
    %8 = arith.addi %c0_i32_4, %7 : i32
    %c0_5 = arith.constant 0 : index
    %c0_6 = arith.constant 0 : index
    %c0_7 = arith.constant 0 : index
    %9 = vector.load %arg3[%c0_5, %c0_6, %c0_7] : memref<1x128x512xbf16, #tpu.memory_space<vmem>>, vector<1x128x512xbf16>
    %10 = vector.shape_cast %9 : vector<1x128x512xbf16> to vector<128x512xbf16>
    %c0_8 = arith.constant 0 : index
    %11 = arith.index_cast %8 : i32 to index
    %c0_9 = arith.constant 0 : index
    %c0_10 = arith.constant 0 : index
    %12 = vector.load %arg2[%c0_8, %11, %c0_9, %c0_10] : memref<1x8x8x512xf32, #tpu.memory_space<vmem>>, vector<1x1x8x512xf32>
    %13 = vector.shape_cast %12 : vector<1x1x8x512xf32> to vector<8x512xf32>
    %14 = arith.truncf %3 : vector<8x128xf32> to vector<8x128xbf16>
    %cst = arith.constant dense<0.000000e+00> : vector<8x512xf32>
    %15 = tpu.matmul %14, %10, %cst {dimension_numbers = #tpu.dot_dimension_numbers<[1], [0], [0], [1], [0, 0, 1, 1], [], []>} : vector<8x128xbf16>, vector<128x512xbf16>, vector<8x512xf32> -> vector<8x512xf32>
    %16 = arith.addf %13, %15 : vector<8x512xf32>
    %17 = vector.extract_strided_slice %16 {offsets = [0, 0], sizes = [8, 128], strides = [1, 1]} : vector<8x512xf32> to vector<8x128xf32>
    %18 = arith.negf %17 : vector<8x128xf32>
    %19 = math.exp %18 : vector<8x128xf32>
    %cst_11 = arith.constant 1.000000e+00 : f32
    %20 = vector.broadcast %cst_11 : f32 to vector<8x128xf32>
    %21 = arith.addf %20, %19 : vector<8x128xf32>
    %22 = arith.divf %20, %21 : vector<8x128xf32>
    %23 = vector.extract_strided_slice %16 {offsets = [0, 128], sizes = [8, 128], strides = [1, 1]} : vector<8x512xf32> to vector<8x128xf32>
    %24 = arith.negf %23 : vector<8x128xf32>
    %25 = math.exp %24 : vector<8x128xf32>
    %cst_12 = arith.constant 1.000000e+00 : f32
    %26 = vector.broadcast %cst_12 : f32 to vector<8x128xf32>
    %27 = arith.addf %26, %25 : vector<8x128xf32>
    %28 = arith.divf %26, %27 : vector<8x128xf32>
    %29 = vector.extract_strided_slice %16 {offsets = [0, 256], sizes = [8, 128], strides = [1, 1]} : vector<8x512xf32> to vector<8x128xf32>
    %30 = math.tanh %29 : vector<8x128xf32>
    %31 = vector.extract_strided_slice %16 {offsets = [0, 384], sizes = [8, 128], strides = [1, 1]} : vector<8x512xf32> to vector<8x128xf32>
    %32 = arith.negf %31 : vector<8x128xf32>
    %33 = math.exp %32 : vector<8x128xf32>
    %cst_13 = arith.constant 1.000000e+00 : f32
    %34 = vector.broadcast %cst_13 : f32 to vector<8x128xf32>
    %35 = arith.addf %34, %33 : vector<8x128xf32>
    %36 = arith.divf %34, %35 : vector<8x128xf32>
    %37 = arith.mulf %28, %4 : vector<8x128xf32>
    %38 = arith.mulf %22, %30 : vector<8x128xf32>
    %39 = arith.addf %37, %38 : vector<8x128xf32>
    %40 = math.tanh %39 : vector<8x128xf32>
    %41 = arith.mulf %36, %40 : vector<8x128xf32>
    %c0_14 = arith.constant 0 : index
    %42 = arith.index_cast %8 : i32 to index
    %c0_15 = arith.constant 0 : index
    %c0_16 = arith.constant 0 : index
    %43 = vector.load %arg4[%c0_14, %42, %c0_15, %c0_16] : memref<1x8x8x128xf32, #tpu.memory_space<vmem>>, vector<1x1x8x128xf32>
    %44 = vector.shape_cast %43 : vector<1x1x8x128xf32> to vector<8x128xf32>
    %45 = vector.shape_cast %41 : vector<8x128xf32> to vector<1x1x8x128xf32>
    tpu.vector_store %arg4[%c0_14, %42, %c0_15, %c0_16], %45 {strides = array<i32>} : memref<1x8x8x128xf32, #tpu.memory_space<vmem>>, vector<1x1x8x128xf32>,
    %c1_i32 = arith.constant 1 : i32
    %c2_i32_17 = arith.constant 2 : i32
    %46 = arith.muli %c2_i32_17, %c1_i32 : i32
    %c7_i32_18 = arith.constant 7 : i32
    %47 = arith.subi %c7_i32_18, %46 : i32
    %48 = arith.muli %arg0, %47 : i32
    %49 = arith.addi %c1_i32, %48 : i32
    %c0_19 = arith.constant 0 : index
    %c0_20 = arith.constant 0 : index
    %c0_21 = arith.constant 0 : index
    %50 = vector.load %arg3[%c0_19, %c0_20, %c0_21] : memref<1x128x512xbf16, #tpu.memory_space<vmem>>, vector<1x128x512xbf16>
    %51 = vector.shape_cast %50 : vector<1x128x512xbf16> to vector<128x512xbf16>
    %c0_22 = arith.constant 0 : index
    %52 = arith.index_cast %49 : i32 to index
    %c0_23 = arith.constant 0 : index
    %c0_24 = arith.constant 0 : index
    %53 = vector.load %arg2[%c0_22, %52, %c0_23, %c0_24] : memref<1x8x8x512xf32, #tpu.memory_space<vmem>>, vector<1x1x8x512xf32>
    %54 = vector.shape_cast %53 : vector<1x1x8x512xf32> to vector<8x512xf32>
    %55 = arith.truncf %41 : vector<8x128xf32> to vector<8x128xbf16>
    %cst_25 = arith.constant dense<0.000000e+00> : vector<8x512xf32>
    %56 = tpu.matmul %55, %51, %cst_25 {dimension_numbers = #tpu.dot_dimension_numbers<[1], [0], [0], [1], [0, 0, 1, 1], [], []>} : vector<8x128xbf16>, vector<128x512xbf16>, vector<8x512xf32> -> vector<8x512xf32>
    %57 = arith.addf %54, %56 : vector<8x512xf32>
    %58 = vector.extract_strided_slice %57 {offsets = [0, 0], sizes = [8, 128], strides = [1, 1]} : vector<8x512xf32> to vector<8x128xf32>
    %59 = arith.negf %58 : vector<8x128xf32>
    %60 = math.exp %59 : vector<8x128xf32>
    %cst_26 = arith.constant 1.000000e+00 : f32
    %61 = vector.broadcast %cst_26 : f32 to vector<8x128xf32>
    %62 = arith.addf %61, %60 : vector<8x128xf32>
    %63 = arith.divf %61, %62 : vector<8x128xf32>
    %64 = vector.extract_strided_slice %57 {offsets = [0, 128], sizes = [8, 128], strides = [1, 1]} : vector<8x512xf32> to vector<8x128xf32>
    %65 = arith.negf %64 : vector<8x128xf32>
    %66 = math.exp %65 : vector<8x128xf32>
    %cst_27 = arith.constant 1.000000e+00 : f32
    %67 = vector.broadcast %cst_27 : f32 to vector<8x128xf32>
    %68 = arith.addf %67, %66 : vector<8x128xf32>
    %69 = arith.divf %67, %68 : vector<8x128xf32>
    %70 = vector.extract_strided_slice %57 {offsets = [0, 256], sizes = [8, 128], strides = [1, 1]} : vector<8x512xf32> to vector<8x128xf32>
    %71 = math.tanh %70 : vector<8x128xf32>
    %72 = vector.extract_strided_slice %57 {offsets = [0, 384], sizes = [8, 128], strides = [1, 1]} : vector<8x512xf32> to vector<8x128xf32>
    %73 = arith.negf %72 : vector<8x128xf32>
    %74 = math.exp %73 : vector<8x128xf32>
    %cst_28 = arith.constant 1.000000e+00 : f32
    %75 = vector.broadcast %cst_28 : f32 to vector<8x128xf32>
    %76 = arith.addf %75, %74 : vector<8x128xf32>
    %77 = arith.divf %75, %76 : vector<8x128xf32>
    %78 = arith.mulf %69, %39 : vector<8x128xf32>
    %79 = arith.mulf %63, %71 : vector<8x128xf32>
    %80 = arith.addf %78, %79 : vector<8x128xf32>
    %81 = math.tanh %80 : vector<8x128xf32>
    %82 = arith.mulf %77, %81 : vector<8x128xf32>
    %c0_29 = arith.constant 0 : index
    %83 = arith.index_cast %49 : i32 to index
    %c0_30 = arith.constant 0 : index
    %c0_31 = arith.constant 0 : index
    %84 = vector.load %arg4[%c0_29, %83, %c0_30, %c0_31] : memref<1x8x8x128xf32, #tpu.memory_space<vmem>>, vector<1x1x8x128xf32>
    %85 = vector.shape_cast %84 : vector<1x1x8x128xf32> to vector<8x128xf32>
    %86 = vector.shape_cast %82 : vector<8x128xf32> to vector<1x1x8x128xf32>
    tpu.vector_store %arg4[%c0_29, %83, %c0_30, %c0_31], %86 {strides = array<i32>} : memref<1x8x8x128xf32, #tpu.memory_space<vmem>>, vector<1x1x8x128xf32>,
    %c2_i32_32 = arith.constant 2 : i32
    %c2_i32_33 = arith.constant 2 : i32
    %87 = arith.muli %c2_i32_33, %c2_i32_32 : i32
    %c7_i32_34 = arith.constant 7 : i32
    %88 = arith.subi %c7_i32_34, %87 : i32
    %89 = arith.muli %arg0, %88 : i32
    %90 = arith.addi %c2_i32_32, %89 : i32
    %c0_35 = arith.constant 0 : index
    %c0_36 = arith.constant 0 : index
    %c0_37 = arith.constant 0 : index
    %91 = vector.load %arg3[%c0_35, %c0_36, %c0_37] : memref<1x128x512xbf16, #tpu.memory_space<vmem>>, vector<1x128x512xbf16>
    %92 = vector.shape_cast %91 : vector<1x128x512xbf16> to vector<128x512xbf16>
    %c0_38 = arith.constant 0 : index
    %93 = arith.index_cast %90 : i32 to index
    %c0_39 = arith.constant 0 : index
    %c0_40 = arith.constant 0 : index
    %94 = vector.load %arg2[%c0_38, %93, %c0_39, %c0_40] : memref<1x8x8x512xf32, #tpu.memory_space<vmem>>, vector<1x1x8x512xf32>
    %95 = vector.shape_cast %94 : vector<1x1x8x512xf32> to vector<8x512xf32>
    %96 = arith.truncf %82 : vector<8x128xf32> to vector<8x128xbf16>
    %cst_41 = arith.constant dense<0.000000e+00> : vector<8x512xf32>
    %97 = tpu.matmul %96, %92, %cst_41 {dimension_numbers = #tpu.dot_dimension_numbers<[1], [0], [0], [1], [0, 0, 1, 1], [], []>} : vector<8x128xbf16>, vector<128x512xbf16>, vector<8x512xf32> -> vector<8x512xf32>
    %98 = arith.addf %95, %97 : vector<8x512xf32>
    %99 = vector.extract_strided_slice %98 {offsets = [0, 0], sizes = [8, 128], strides = [1, 1]} : vector<8x512xf32> to vector<8x128xf32>
    %100 = arith.negf %99 : vector<8x128xf32>
    %101 = math.exp %100 : vector<8x128xf32>
    %cst_42 = arith.constant 1.000000e+00 : f32
    %102 = vector.broadcast %cst_42 : f32 to vector<8x128xf32>
    %103 = arith.addf %102, %101 : vector<8x128xf32>
    %104 = arith.divf %102, %103 : vector<8x128xf32>
    %105 = vector.extract_strided_slice %98 {offsets = [0, 128], sizes = [8, 128], strides = [1, 1]} : vector<8x512xf32> to vector<8x128xf32>
    %106 = arith.negf %105 : vector<8x128xf32>
    %107 = math.exp %106 : vector<8x128xf32>
    %cst_43 = arith.constant 1.000000e+00 : f32
    %108 = vector.broadcast %cst_43 : f32 to vector<8x128xf32>
    %109 = arith.addf %108, %107 : vector<8x128xf32>
    %110 = arith.divf %108, %109 : vector<8x128xf32>
    %111 = vector.extract_strided_slice %98 {offsets = [0, 256], sizes = [8, 128], strides = [1, 1]} : vector<8x512xf32> to vector<8x128xf32>
    %112 = math.tanh %111 : vector<8x128xf32>
    %113 = vector.extract_strided_slice %98 {offsets = [0, 384], sizes = [8, 128], strides = [1, 1]} : vector<8x512xf32> to vector<8x128xf32>
    %114 = arith.negf %113 : vector<8x128xf32>
    %115 = math.exp %114 : vector<8x128xf32>
    %cst_44 = arith.constant 1.000000e+00 : f32
    %116 = vector.broadcast %cst_44 : f32 to vector<8x128xf32>
    %117 = arith.addf %116, %115 : vector<8x128xf32>
    %118 = arith.divf %116, %117 : vector<8x128xf32>
    %119 = arith.mulf %110, %80 : vector<8x128xf32>
    %120 = arith.mulf %104, %112 : vector<8x128xf32>
    %121 = arith.addf %119, %120 : vector<8x128xf32>
    %122 = math.tanh %121 : vector<8x128xf32>
    %123 = arith.mulf %118, %122 : vector<8x128xf32>
    %c0_45 = arith.constant 0 : index
    %124 = arith.index_cast %90 : i32 to index
    %c0_46 = arith.constant 0 : index
    %c0_47 = arith.constant 0 : index
    %125 = vector.load %arg4[%c0_45, %124, %c0_46, %c0_47] : memref<1x8x8x128xf32, #tpu.memory_space<vmem>>, vector<1x1x8x128xf32>
    %126 = vector.shape_cast %125 : vector<1x1x8x128xf32> to vector<8x128xf32>
    %127 = vector.shape_cast %123 : vector<8x128xf32> to vector<1x1x8x128xf32>
    tpu.vector_store %arg4[%c0_45, %124, %c0_46, %c0_47], %127 {strides = array<i32>} : memref<1x8x8x128xf32, #tpu.memory_space<vmem>>, vector<1x1x8x128xf32>,
    %c3_i32 = arith.constant 3 : i32
    %c2_i32_48 = arith.constant 2 : i32
    %128 = arith.muli %c2_i32_48, %c3_i32 : i32
    %c7_i32_49 = arith.constant 7 : i32
    %129 = arith.subi %c7_i32_49, %128 : i32
    %130 = arith.muli %arg0, %129 : i32
    %131 = arith.addi %c3_i32, %130 : i32
    %c0_50 = arith.constant 0 : index
    %c0_51 = arith.constant 0 : index
    %c0_52 = arith.constant 0 : index
    %132 = vector.load %arg3[%c0_50, %c0_51, %c0_52] : memref<1x128x512xbf16, #tpu.memory_space<vmem>>, vector<1x128x512xbf16>
    %133 = vector.shape_cast %132 : vector<1x128x512xbf16> to vector<128x512xbf16>
    %c0_53 = arith.constant 0 : index
    %134 = arith.index_cast %131 : i32 to index
    %c0_54 = arith.constant 0 : index
    %c0_55 = arith.constant 0 : index
    %135 = vector.load %arg2[%c0_53, %134, %c0_54, %c0_55] : memref<1x8x8x512xf32, #tpu.memory_space<vmem>>, vector<1x1x8x512xf32>
    %136 = vector.shape_cast %135 : vector<1x1x8x512xf32> to vector<8x512xf32>
    %137 = arith.truncf %123 : vector<8x128xf32> to vector<8x128xbf16>
    %cst_56 = arith.constant dense<0.000000e+00> : vector<8x512xf32>
    %138 = tpu.matmul %137, %133, %cst_56 {dimension_numbers = #tpu.dot_dimension_numbers<[1], [0], [0], [1], [0, 0, 1, 1], [], []>} : vector<8x128xbf16>, vector<128x512xbf16>, vector<8x512xf32> -> vector<8x512xf32>
    %139 = arith.addf %136, %138 : vector<8x512xf32>
    %140 = vector.extract_strided_slice %139 {offsets = [0, 0], sizes = [8, 128], strides = [1, 1]} : vector<8x512xf32> to vector<8x128xf32>
    %141 = arith.negf %140 : vector<8x128xf32>
    %142 = math.exp %141 : vector<8x128xf32>
    %cst_57 = arith.constant 1.000000e+00 : f32
    %143 = vector.broadcast %cst_57 : f32 to vector<8x128xf32>
    %144 = arith.addf %143, %142 : vector<8x128xf32>
    %145 = arith.divf %143, %144 : vector<8x128xf32>
    %146 = vector.extract_strided_slice %139 {offsets = [0, 128], sizes = [8, 128], strides = [1, 1]} : vector<8x512xf32> to vector<8x128xf32>
    %147 = arith.negf %146 : vector<8x128xf32>
    %148 = math.exp %147 : vector<8x128xf32>
    %cst_58 = arith.constant 1.000000e+00 : f32
    %149 = vector.broadcast %cst_58 : f32 to vector<8x128xf32>
    %150 = arith.addf %149, %148 : vector<8x128xf32>
    %151 = arith.divf %149, %150 : vector<8x128xf32>
    %152 = vector.extract_strided_slice %139 {offsets = [0, 256], sizes = [8, 128], strides = [1, 1]} : vector<8x512xf32> to vector<8x128xf32>
    %153 = math.tanh %152 : vector<8x128xf32>
    %154 = vector.extract_strided_slice %139 {offsets = [0, 384], sizes = [8, 128], strides = [1, 1]} : vector<8x512xf32> to vector<8x128xf32>
    %155 = arith.negf %154 : vector<8x128xf32>
    %156 = math.exp %155 : vector<8x128xf32>
    %cst_59 = arith.constant 1.000000e+00 : f32
    %157 = vector.broadcast %cst_59 : f32 to vector<8x128xf32>
    %158 = arith.addf %157, %156 : vector<8x128xf32>
    %159 = arith.divf %157, %158 : vector<8x128xf32>
    %160 = arith.mulf %151, %121 : vector<8x128xf32>
    %161 = arith.mulf %145, %153 : vector<8x128xf32>
    %162 = arith.addf %160, %161 : vector<8x128xf32>
    %163 = math.tanh %162 : vector<8x128xf32>
    %164 = arith.mulf %159, %163 : vector<8x128xf32>
    %c0_60 = arith.constant 0 : index
    %165 = arith.index_cast %131 : i32 to index
    %c0_61 = arith.constant 0 : index
    %c0_62 = arith.constant 0 : index
    %166 = vector.load %arg4[%c0_60, %165, %c0_61, %c0_62] : memref<1x8x8x128xf32, #tpu.memory_space<vmem>>, vector<1x1x8x128xf32>
    %167 = vector.shape_cast %166 : vector<1x1x8x128xf32> to vector<8x128xf32>
    %168 = vector.shape_cast %164 : vector<8x128xf32> to vector<1x1x8x128xf32>
    tpu.vector_store %arg4[%c0_60, %165, %c0_61, %c0_62], %168 {strides = array<i32>} : memref<1x8x8x128xf32, #tpu.memory_space<vmem>>, vector<1x1x8x128xf32>,
    %c4_i32 = arith.constant 4 : i32
    %c2_i32_63 = arith.constant 2 : i32
    %169 = arith.muli %c2_i32_63, %c4_i32 : i32
    %c7_i32_64 = arith.constant 7 : i32
    %170 = arith.subi %c7_i32_64, %169 : i32
    %171 = arith.muli %arg0, %170 : i32
    %172 = arith.addi %c4_i32, %171 : i32
    %c0_65 = arith.constant 0 : index
    %c0_66 = arith.constant 0 : index
    %c0_67 = arith.constant 0 : index
    %173 = vector.load %arg3[%c0_65, %c0_66, %c0_67] : memref<1x128x512xbf16, #tpu.memory_space<vmem>>, vector<1x128x512xbf16>
    %174 = vector.shape_cast %173 : vector<1x128x512xbf16> to vector<128x512xbf16>
    %c0_68 = arith.constant 0 : index
    %175 = arith.index_cast %172 : i32 to index
    %c0_69 = arith.constant 0 : index
    %c0_70 = arith.constant 0 : index
    %176 = vector.load %arg2[%c0_68, %175, %c0_69, %c0_70] : memref<1x8x8x512xf32, #tpu.memory_space<vmem>>, vector<1x1x8x512xf32>
    %177 = vector.shape_cast %176 : vector<1x1x8x512xf32> to vector<8x512xf32>
    %178 = arith.truncf %164 : vector<8x128xf32> to vector<8x128xbf16>
    %cst_71 = arith.constant dense<0.000000e+00> : vector<8x512xf32>
    %179 = tpu.matmul %178, %174, %cst_71 {dimension_numbers = #tpu.dot_dimension_numbers<[1], [0], [0], [1], [0, 0, 1, 1], [], []>} : vector<8x128xbf16>, vector<128x512xbf16>, vector<8x512xf32> -> vector<8x512xf32>
    %180 = arith.addf %177, %179 : vector<8x512xf32>
    %181 = vector.extract_strided_slice %180 {offsets = [0, 0], sizes = [8, 128], strides = [1, 1]} : vector<8x512xf32> to vector<8x128xf32>
    %182 = arith.negf %181 : vector<8x128xf32>
    %183 = math.exp %182 : vector<8x128xf32>
    %cst_72 = arith.constant 1.000000e+00 : f32
    %184 = vector.broadcast %cst_72 : f32 to vector<8x128xf32>
    %185 = arith.addf %184, %183 : vector<8x128xf32>
    %186 = arith.divf %184, %185 : vector<8x128xf32>
    %187 = vector.extract_strided_slice %180 {offsets = [0, 128], sizes = [8, 128], strides = [1, 1]} : vector<8x512xf32> to vector<8x128xf32>
    %188 = arith.negf %187 : vector<8x128xf32>
    %189 = math.exp %188 : vector<8x128xf32>
    %cst_73 = arith.constant 1.000000e+00 : f32
    %190 = vector.broadcast %cst_73 : f32 to vector<8x128xf32>
    %191 = arith.addf %190, %189 : vector<8x128xf32>
    %192 = arith.divf %190, %191 : vector<8x128xf32>
    %193 = vector.extract_strided_slice %180 {offsets = [0, 256], sizes = [8, 128], strides = [1, 1]} : vector<8x512xf32> to vector<8x128xf32>
    %194 = math.tanh %193 : vector<8x128xf32>
    %195 = vector.extract_strided_slice %180 {offsets = [0, 384], sizes = [8, 128], strides = [1, 1]} : vector<8x512xf32> to vector<8x128xf32>
    %196 = arith.negf %195 : vector<8x128xf32>
    %197 = math.exp %196 : vector<8x128xf32>
    %cst_74 = arith.constant 1.000000e+00 : f32
    %198 = vector.broadcast %cst_74 : f32 to vector<8x128xf32>
    %199 = arith.addf %198, %197 : vector<8x128xf32>
    %200 = arith.divf %198, %199 : vector<8x128xf32>
    %201 = arith.mulf %192, %162 : vector<8x128xf32>
    %202 = arith.mulf %186, %194 : vector<8x128xf32>
    %203 = arith.addf %201, %202 : vector<8x128xf32>
    %204 = math.tanh %203 : vector<8x128xf32>
    %205 = arith.mulf %200, %204 : vector<8x128xf32>
    %c0_75 = arith.constant 0 : index
    %206 = arith.index_cast %172 : i32 to index
    %c0_76 = arith.constant 0 : index
    %c0_77 = arith.constant 0 : index
    %207 = vector.load %arg4[%c0_75, %206, %c0_76, %c0_77] : memref<1x8x8x128xf32, #tpu.memory_space<vmem>>, vector<1x1x8x128xf32>
    %208 = vector.shape_cast %207 : vector<1x1x8x128xf32> to vector<8x128xf32>
    %209 = vector.shape_cast %205 : vector<8x128xf32> to vector<1x1x8x128xf32>
    tpu.vector_store %arg4[%c0_75, %206, %c0_76, %c0_77], %209 {strides = array<i32>} : memref<1x8x8x128xf32, #tpu.memory_space<vmem>>, vector<1x1x8x128xf32>,
    %c5_i32 = arith.constant 5 : i32
    %c2_i32_78 = arith.constant 2 : i32
    %210 = arith.muli %c2_i32_78, %c5_i32 : i32
    %c7_i32_79 = arith.constant 7 : i32
    %211 = arith.subi %c7_i32_79, %210 : i32
    %212 = arith.muli %arg0, %211 : i32
    %213 = arith.addi %c5_i32, %212 : i32
    %c0_80 = arith.constant 0 : index
    %c0_81 = arith.constant 0 : index
    %c0_82 = arith.constant 0 : index
    %214 = vector.load %arg3[%c0_80, %c0_81, %c0_82] : memref<1x128x512xbf16, #tpu.memory_space<vmem>>, vector<1x128x512xbf16>
    %215 = vector.shape_cast %214 : vector<1x128x512xbf16> to vector<128x512xbf16>
    %c0_83 = arith.constant 0 : index
    %216 = arith.index_cast %213 : i32 to index
    %c0_84 = arith.constant 0 : index
    %c0_85 = arith.constant 0 : index
    %217 = vector.load %arg2[%c0_83, %216, %c0_84, %c0_85] : memref<1x8x8x512xf32, #tpu.memory_space<vmem>>, vector<1x1x8x512xf32>
    %218 = vector.shape_cast %217 : vector<1x1x8x512xf32> to vector<8x512xf32>
    %219 = arith.truncf %205 : vector<8x128xf32> to vector<8x128xbf16>
    %cst_86 = arith.constant dense<0.000000e+00> : vector<8x512xf32>
    %220 = tpu.matmul %219, %215, %cst_86 {dimension_numbers = #tpu.dot_dimension_numbers<[1], [0], [0], [1], [0, 0, 1, 1], [], []>} : vector<8x128xbf16>, vector<128x512xbf16>, vector<8x512xf32> -> vector<8x512xf32>
    %221 = arith.addf %218, %220 : vector<8x512xf32>
    %222 = vector.extract_strided_slice %221 {offsets = [0, 0], sizes = [8, 128], strides = [1, 1]} : vector<8x512xf32> to vector<8x128xf32>
    %223 = arith.negf %222 : vector<8x128xf32>
    %224 = math.exp %223 : vector<8x128xf32>
    %cst_87 = arith.constant 1.000000e+00 : f32
    %225 = vector.broadcast %cst_87 : f32 to vector<8x128xf32>
    %226 = arith.addf %225, %224 : vector<8x128xf32>
    %227 = arith.divf %225, %226 : vector<8x128xf32>
    %228 = vector.extract_strided_slice %221 {offsets = [0, 128], sizes = [8, 128], strides = [1, 1]} : vector<8x512xf32> to vector<8x128xf32>
    %229 = arith.negf %228 : vector<8x128xf32>
    %230 = math.exp %229 : vector<8x128xf32>
    %cst_88 = arith.constant 1.000000e+00 : f32
    %231 = vector.broadcast %cst_88 : f32 to vector<8x128xf32>
    %232 = arith.addf %231, %230 : vector<8x128xf32>
    %233 = arith.divf %231, %232 : vector<8x128xf32>
    %234 = vector.extract_strided_slice %221 {offsets = [0, 256], sizes = [8, 128], strides = [1, 1]} : vector<8x512xf32> to vector<8x128xf32>
    %235 = math.tanh %234 : vector<8x128xf32>
    %236 = vector.extract_strided_slice %221 {offsets = [0, 384], sizes = [8, 128], strides = [1, 1]} : vector<8x512xf32> to vector<8x128xf32>
    %237 = arith.negf %236 : vector<8x128xf32>
    %238 = math.exp %237 : vector<8x128xf32>
    %cst_89 = arith.constant 1.000000e+00 : f32
    %239 = vector.broadcast %cst_89 : f32 to vector<8x128xf32>
    %240 = arith.addf %239, %238 : vector<8x128xf32>
    %241 = arith.divf %239, %240 : vector<8x128xf32>
    %242 = arith.mulf %233, %203 : vector<8x128xf32>
    %243 = arith.mulf %227, %235 : vector<8x128xf32>
    %244 = arith.addf %242, %243 : vector<8x128xf32>
    %245 = math.tanh %244 : vector<8x128xf32>
    %246 = arith.mulf %241, %245 : vector<8x128xf32>
    %c0_90 = arith.constant 0 : index
    %247 = arith.index_cast %213 : i32 to index
    %c0_91 = arith.constant 0 : index
    %c0_92 = arith.constant 0 : index
    %248 = vector.load %arg4[%c0_90, %247, %c0_91, %c0_92] : memref<1x8x8x128xf32, #tpu.memory_space<vmem>>, vector<1x1x8x128xf32>
    %249 = vector.shape_cast %248 : vector<1x1x8x128xf32> to vector<8x128xf32>
    %250 = vector.shape_cast %246 : vector<8x128xf32> to vector<1x1x8x128xf32>
    tpu.vector_store %arg4[%c0_90, %247, %c0_91, %c0_92], %250 {strides = array<i32>} : memref<1x8x8x128xf32, #tpu.memory_space<vmem>>, vector<1x1x8x128xf32>,
    %c6_i32 = arith.constant 6 : i32
    %c2_i32_93 = arith.constant 2 : i32
    %251 = arith.muli %c2_i32_93, %c6_i32 : i32
    %c7_i32_94 = arith.constant 7 : i32
    %252 = arith.subi %c7_i32_94, %251 : i32
    %253 = arith.muli %arg0, %252 : i32
    %254 = arith.addi %c6_i32, %253 : i32
    %c0_95 = arith.constant 0 : index
    %c0_96 = arith.constant 0 : index
    %c0_97 = arith.constant 0 : index
    %255 = vector.load %arg3[%c0_95, %c0_96, %c0_97] : memref<1x128x512xbf16, #tpu.memory_space<vmem>>, vector<1x128x512xbf16>
    %256 = vector.shape_cast %255 : vector<1x128x512xbf16> to vector<128x512xbf16>
    %c0_98 = arith.constant 0 : index
    %257 = arith.index_cast %254 : i32 to index
    %c0_99 = arith.constant 0 : index
    %c0_100 = arith.constant 0 : index
    %258 = vector.load %arg2[%c0_98, %257, %c0_99, %c0_100] : memref<1x8x8x512xf32, #tpu.memory_space<vmem>>, vector<1x1x8x512xf32>
    %259 = vector.shape_cast %258 : vector<1x1x8x512xf32> to vector<8x512xf32>
    %260 = arith.truncf %246 : vector<8x128xf32> to vector<8x128xbf16>
    %cst_101 = arith.constant dense<0.000000e+00> : vector<8x512xf32>
    %261 = tpu.matmul %260, %256, %cst_101 {dimension_numbers = #tpu.dot_dimension_numbers<[1], [0], [0], [1], [0, 0, 1, 1], [], []>} : vector<8x128xbf16>, vector<128x512xbf16>, vector<8x512xf32> -> vector<8x512xf32>
    %262 = arith.addf %259, %261 : vector<8x512xf32>
    %263 = vector.extract_strided_slice %262 {offsets = [0, 0], sizes = [8, 128], strides = [1, 1]} : vector<8x512xf32> to vector<8x128xf32>
    %264 = arith.negf %263 : vector<8x128xf32>
    %265 = math.exp %264 : vector<8x128xf32>
    %cst_102 = arith.constant 1.000000e+00 : f32
    %266 = vector.broadcast %cst_102 : f32 to vector<8x128xf32>
    %267 = arith.addf %266, %265 : vector<8x128xf32>
    %268 = arith.divf %266, %267 : vector<8x128xf32>
    %269 = vector.extract_strided_slice %262 {offsets = [0, 128], sizes = [8, 128], strides = [1, 1]} : vector<8x512xf32> to vector<8x128xf32>
    %270 = arith.negf %269 : vector<8x128xf32>
    %271 = math.exp %270 : vector<8x128xf32>
    %cst_103 = arith.constant 1.000000e+00 : f32
    %272 = vector.broadcast %cst_103 : f32 to vector<8x128xf32>
    %273 = arith.addf %272, %271 : vector<8x128xf32>
    %274 = arith.divf %272, %273 : vector<8x128xf32>
    %275 = vector.extract_strided_slice %262 {offsets = [0, 256], sizes = [8, 128], strides = [1, 1]} : vector<8x512xf32> to vector<8x128xf32>
    %276 = math.tanh %275 : vector<8x128xf32>
    %277 = vector.extract_strided_slice %262 {offsets = [0, 384], sizes = [8, 128], strides = [1, 1]} : vector<8x512xf32> to vector<8x128xf32>
    %278 = arith.negf %277 : vector<8x128xf32>
    %279 = math.exp %278 : vector<8x128xf32>
    %cst_104 = arith.constant 1.000000e+00 : f32
    %280 = vector.broadcast %cst_104 : f32 to vector<8x128xf32>
    %281 = arith.addf %280, %279 : vector<8x128xf32>
    %282 = arith.divf %280, %281 : vector<8x128xf32>
    %283 = arith.mulf %274, %244 : vector<8x128xf32>
    %284 = arith.mulf %268, %276 : vector<8x128xf32>
    %285 = arith.addf %283, %284 : vector<8x128xf32>
    %286 = math.tanh %285 : vector<8x128xf32>
    %287 = arith.mulf %282, %286 : vector<8x128xf32>
    %c0_105 = arith.constant 0 : index
    %288 = arith.index_cast %254 : i32 to index
    %c0_106 = arith.constant 0 : index
    %c0_107 = arith.constant 0 : index
    %289 = vector.load %arg4[%c0_105, %288, %c0_106, %c0_107] : memref<1x8x8x128xf32, #tpu.memory_space<vmem>>, vector<1x1x8x128xf32>
    %290 = vector.shape_cast %289 : vector<1x1x8x128xf32> to vector<8x128xf32>
    %291 = vector.shape_cast %287 : vector<8x128xf32> to vector<1x1x8x128xf32>
    tpu.vector_store %arg4[%c0_105, %288, %c0_106, %c0_107], %291 {strides = array<i32>} : memref<1x8x8x128xf32, #tpu.memory_space<vmem>>, vector<1x1x8x128xf32>,
    %c7_i32_108 = arith.constant 7 : i32
    %c2_i32_109 = arith.constant 2 : i32
    %292 = arith.muli %c2_i32_109, %c7_i32_108 : i32
    %c7_i32_110 = arith.constant 7 : i32
    %293 = arith.subi %c7_i32_110, %292 : i32
    %294 = arith.muli %arg0, %293 : i32
    %295 = arith.addi %c7_i32_108, %294 : i32
    %c0_111 = arith.constant 0 : index
    %c0_112 = arith.constant 0 : index
    %c0_113 = arith.constant 0 : index
    %296 = vector.load %arg3[%c0_111, %c0_112, %c0_113] : memref<1x128x512xbf16, #tpu.memory_space<vmem>>, vector<1x128x512xbf16>
    %297 = vector.shape_cast %296 : vector<1x128x512xbf16> to vector<128x512xbf16>
    %c0_114 = arith.constant 0 : index
    %298 = arith.index_cast %295 : i32 to index
    %c0_115 = arith.constant 0 : index
    %c0_116 = arith.constant 0 : index
    %299 = vector.load %arg2[%c0_114, %298, %c0_115, %c0_116] : memref<1x8x8x512xf32, #tpu.memory_space<vmem>>, vector<1x1x8x512xf32>
    %300 = vector.shape_cast %299 : vector<1x1x8x512xf32> to vector<8x512xf32>
    %301 = arith.truncf %287 : vector<8x128xf32> to vector<8x128xbf16>
    %cst_117 = arith.constant dense<0.000000e+00> : vector<8x512xf32>
    %302 = tpu.matmul %301, %297, %cst_117 {dimension_numbers = #tpu.dot_dimension_numbers<[1], [0], [0], [1], [0, 0, 1, 1], [], []>} : vector<8x128xbf16>, vector<128x512xbf16>, vector<8x512xf32> -> vector<8x512xf32>
    %303 = arith.addf %300, %302 : vector<8x512xf32>
    %304 = vector.extract_strided_slice %303 {offsets = [0, 0], sizes = [8, 128], strides = [1, 1]} : vector<8x512xf32> to vector<8x128xf32>
    %305 = arith.negf %304 : vector<8x128xf32>
    %306 = math.exp %305 : vector<8x128xf32>
    %cst_118 = arith.constant 1.000000e+00 : f32
    %307 = vector.broadcast %cst_118 : f32 to vector<8x128xf32>
    %308 = arith.addf %307, %306 : vector<8x128xf32>
    %309 = arith.divf %307, %308 : vector<8x128xf32>
    %310 = vector.extract_strided_slice %303 {offsets = [0, 128], sizes = [8, 128], strides = [1, 1]} : vector<8x512xf32> to vector<8x128xf32>
    %311 = arith.negf %310 : vector<8x128xf32>
    %312 = math.exp %311 : vector<8x128xf32>
    %cst_119 = arith.constant 1.000000e+00 : f32
    %313 = vector.broadcast %cst_119 : f32 to vector<8x128xf32>
    %314 = arith.addf %313, %312 : vector<8x128xf32>
    %315 = arith.divf %313, %314 : vector<8x128xf32>
    %316 = vector.extract_strided_slice %303 {offsets = [0, 256], sizes = [8, 128], strides = [1, 1]} : vector<8x512xf32> to vector<8x128xf32>
    %317 = math.tanh %316 : vector<8x128xf32>
    %318 = vector.extract_strided_slice %303 {offsets = [0, 384], sizes = [8, 128], strides = [1, 1]} : vector<8x512xf32> to vector<8x128xf32>
    %319 = arith.negf %318 : vector<8x128xf32>
    %320 = math.exp %319 : vector<8x128xf32>
    %cst_120 = arith.constant 1.000000e+00 : f32
    %321 = vector.broadcast %cst_120 : f32 to vector<8x128xf32>
    %322 = arith.addf %321, %320 : vector<8x128xf32>
    %323 = arith.divf %321, %322 : vector<8x128xf32>
    %324 = arith.mulf %315, %285 : vector<8x128xf32>
    %325 = arith.mulf %309, %317 : vector<8x128xf32>
    %326 = arith.addf %324, %325 : vector<8x128xf32>
    %327 = math.tanh %326 : vector<8x128xf32>
    %328 = arith.mulf %323, %327 : vector<8x128xf32>
    %c0_121 = arith.constant 0 : index
    %329 = arith.index_cast %295 : i32 to index
    %c0_122 = arith.constant 0 : index
    %c0_123 = arith.constant 0 : index
    %330 = vector.load %arg4[%c0_121, %329, %c0_122, %c0_123] : memref<1x8x8x128xf32, #tpu.memory_space<vmem>>, vector<1x1x8x128xf32>
    %331 = vector.shape_cast %330 : vector<1x1x8x128xf32> to vector<8x128xf32>
    %332 = vector.shape_cast %328 : vector<8x128xf32> to vector<1x1x8x128xf32>
    tpu.vector_store %arg4[%c0_121, %329, %c0_122, %c0_123], %332 {strides = array<i32>} : memref<1x8x8x128xf32, #tpu.memory_space<vmem>>, vector<1x1x8x128xf32>,
    %c8_i32 = arith.constant 8 : i32
    %c0_124 = arith.constant 0 : index
    %c0_125 = arith.constant 0 : index
    %333 = vector.load %arg5[%c0_124, %c0_125] : memref<8x128xf32, #tpu.memory_space<vmem>>, vector<8x128xf32>
    tpu.vector_store %arg5[%c0_124, %c0_125], %328 {strides = array<i32>} : memref<8x128xf32, #tpu.memory_space<vmem>>, vector<8x128xf32>,
    %c0_126 = arith.constant 0 : index
    %c0_127 = arith.constant 0 : index
    %334 = vector.load %arg6[%c0_126, %c0_127] : memref<8x128xf32, #tpu.memory_space<vmem>>, vector<8x128xf32>
    tpu.vector_store %arg6[%c0_126, %c0_127], %326 {strides = array<i32>} : memref<8x128xf32, #tpu.memory_space<vmem>>, vector<8x128xf32>,
    return
  }
  func.func @transform_0(%arg0: i32, %arg1: i32) -> (i32, i32, i32, i32) {
    %c2_i32 = arith.constant 2 : i32
    %0 = arith.muli %c2_i32, %arg1 : i32
    %c0_i32 = arith.constant 0 : i32
    %1 = arith.subi %c0_i32, %0 : i32
    %2 = arith.muli %arg0, %1 : i32
    %3 = arith.addi %arg1, %2 : i32
    %c0_i32_0 = arith.constant 0 : i32
    %c0_i32_1 = arith.constant 0 : i32
    %c0_i32_2 = arith.constant 0 : i32
    return %arg0, %3, %c0_i32_0, %c0_i32_1 : i32, i32, i32, i32
  }
  func.func @transform_1(%arg0: i32, %arg1: i32) -> (i32, i32, i32) {
    %c0_i32 = arith.constant 0 : i32
    %c0_i32_0 = arith.constant 0 : i32
    %c0_i32_1 = arith.constant 0 : i32
    return %arg0, %c0_i32, %c0_i32_0 : i32, i32, i32
  }
  func.func @transform_2(%arg0: i32, %arg1: i32) -> (i32, i32, i32, i32) {
    %c2_i32 = arith.constant 2 : i32
    %0 = arith.muli %c2_i32, %arg1 : i32
    %c0_i32 = arith.constant 0 : i32
    %1 = arith.subi %c0_i32, %0 : i32
    %2 = arith.muli %arg0, %1 : i32
    %3 = arith.addi %arg1, %2 : i32
    %c0_i32_0 = arith.constant 0 : i32
    %c0_i32_1 = arith.constant 0 : i32
    %c0_i32_2 = arith.constant 0 : i32
    return %arg0, %3, %c0_i32_0, %c0_i32_1 : i32, i32, i32, i32
  }
}

</mosaic_0001>

<bundles_post_ra>
// kernel: bidirectional_lstm.5
= control target key start
LH: loop header
LB: loop body
LE: loop exit
PB: predicated region body
PF: predicated region fallthrough
CT: control target
= control target key end

     0   :  { %s606_s1 = inlined_call_operand.vmem [shape: bf16[2,128,128], index: 1, kind: input, shape index: {}]   ;;  %s607_s0 = inlined_call_operand.vmem [shape: f32[2,64,128], index: 0, kind: input, shape index: {}]   ;;  %s608_s2 = inlined_call_operand.vmem [shape: f32[1,128], index: 2, kind: input, shape index: {}]   ;;  %s609_s3 = inlined_call_operand.vmem [shape: f32[64,128], index: 3, kind: output, shape index: {}]  }
   0x1   :  { %v447_v0 = vld [vmem:[%s606_s1 + $0x40] sm:$0xff]   ;;  %v449_v2 = vld [vmem:[%s606_s1 + $0x48] sm:$0xff]   ;;  %v451_v4 = vld [vmem:[%s606_s1 + $0x50] sm:$0xff]  }
   0x2   :  { %v448_v1 = vld [vmem:[%s606_s1] sm:$0xff]   ;;  %391 = vmatprep.subr.bf16.mxu1 %v447_v0  ;;  %v450_v3 = vld [vmem:[%s606_s1 + $0x8] sm:$0xff]   ;;  %v452_v5 = vld [vmem:[%s606_s1 + $0x10] sm:$0xff]  }
   0x3   :  { %415 = vmatprep.subr.bf16.mxu0 %v448_v1  ;;  %392 = vmatpush3.bf16.msra.mxu1 %v447_v0  ;;  %v453_v6 = vld [vmem:[%s606_s1 + $0x58] sm:$0xff]   ;;  %v455_v8 = vld [vmem:[%s606_s1 + $0x60] sm:$0xff]   ;;  %v457_v10 = vld [vmem:[%s606_s1 + $0x68] sm:$0xff]  }
   0x4   :  { %416 = vmatpush3.bf16.msra.mxu0 %v448_v1  ;;  %393 = vmatprep.subr.bf16.mxu1 %v449_v2  ;;  %v454_v7 = vld [vmem:[%s606_s1 + $0x18] sm:$0xff]   ;;  %v456_v9 = vld [vmem:[%s606_s1 + $0x20] sm:$0xff]   ;;  %v327_v12 = vld [vmem:[%s607_s0 + $0x48] sm:$0xff] }
   0x5   :  { %417 = vmatprep.subr.bf16.mxu0 %v450_v3  ;;  %v326_v11 = vld [vmem:[%s607_s0 + $0x40] sm:$0xff]  ;;  %v458_v14 = vld [vmem:[%s606_s1 + $0x28] sm:$0xff]   ;;  %v459_v18 = vld [vmem:[%s606_s1 + $0x70] sm:$0xff]  }
   0x6   :  { %v15_v13 = vld [vmem:[%s607_s0] sm:$0xff]  ;;  %v52_v15 = vpack.c.bf16 %v327_v12, %v326_v11  ;;  %v16_v16 = vld [vmem:[%s607_s0 + $0x8] sm:$0xff]  ;;  %v460_v19 = vld [vmem:[%s606_s1 + $0x30] sm:$0xff]  }
   0x7   :  { %394 = vmatpush3.bf16.msra.mxu1 %v449_v2  ;;  %v23_v17 = vpack.c.bf16 %v16_v16, %v15_v13  ;;  %v461_v20 = vld [vmem:[%s606_s1 + $0x78] sm:$0xff]   ;;  %v328_v22 = vld [vmem:[%s607_s0 + $0x50] sm:$0xff]  ;;  %v330_v26 = vld [vmem:[%s607_s0 + $0x60] sm:$0xff] }
   0x8   :  { %418 = vmatpush3.bf16.msra.mxu0 %v450_v3  ;;  %395 = vmatprep.subr.bf16.mxu1 %v451_v4  ;;  %v462_v21 = vld [vmem:[%s606_s1 + $0x38] sm:$0xff]   ;;  %v17_v24 = vld [vmem:[%s607_s0 + $0x10] sm:$0xff]  ;;  %v331_v27 = vld [vmem:[%s607_s0 + $0x68] sm:$0xff] }
   0x9   :  { %419 = vmatprep.subr.bf16.mxu0 %v452_v5  ;;  %407 = vmatprep.mubr.bf16.mxu1 %v52_v15  ;;  %v329_v23 = vld [vmem:[%s607_s0 + $0x58] sm:$0xff]  ;;  %v19_v28 = vld [vmem:[%s607_s0 + $0x20] sm:$0xff]  ;;  %v20_v29 = vld [vmem:[%s607_s0 + $0x28] sm:$0xff]  ;;  %v54_v32 = vpack.c.bf16 %v331_v27, %v330_v26 }
   0xa   :  { %431 = vmatprep.mubr.bf16.mxu0 %v23_v17  ;;  %v18_v25 = vld [vmem:[%s607_s0 + $0x18] sm:$0xff]  ;;  %v53_v30 = vpack.c.bf16 %v329_v23, %v328_v22  ;;  %v25_v33 = vpack.c.bf16 %v20_v29, %v19_v28  ;;  %v332_v34 = vld [vmem:[%s607_s0 + $0x70] sm:$0xff]  ;;  %v366_v42 = vld [vmem:[%s608_s2] ss:$0 sm:$0xff] }
   0xb   :  { %396 = vmatpush3.bf16.msra.mxu1 %v451_v4  ;;  %v24_v31 = vpack.c.bf16 %v18_v25, %v17_v24  ;;  %v333_v35 = vld [vmem:[%s607_s0 + $0x78] sm:$0xff]  ;;  %v21_v36 = vld [vmem:[%s607_s0 + $0x30] sm:$0xff] }
   0xc   :  { %420 = vmatpush3.bf16.msra.mxu0 %v452_v5  ;;  %397 = vmatprep.subr.bf16.mxu1 %v453_v6  ;;  %v22_v37 = vld [vmem:[%s607_s0 + $0x38] sm:$0xff]  ;;  %v55_v38 = vpack.c.bf16 %v333_v35, %v332_v34 }
   0xd   :  { %421 = vmatprep.subr.bf16.mxu0 %v454_v7  ;;  %v26_v39 = vpack.c.bf16 %v22_v37, %v21_v36 }
   0xf   :  { %398 = vmatpush3.bf16.msra.mxu1 %v453_v6 }
  0x10   :  { %422 = vmatpush3.bf16.msra.mxu0 %v454_v7  ;;  %399 = vmatprep.subr.bf16.mxu1 %v455_v8 }
  0x11   :  { %423 = vmatprep.subr.bf16.mxu0 %v456_v9 }
  0x13   :  { %400 = vmatpush3.bf16.msra.mxu1 %v455_v8 }
  0x14   :  { %424 = vmatpush3.bf16.msra.mxu0 %v456_v9  ;;  %401 = vmatprep.subr.bf16.mxu1 %v457_v10 }
  0x15   :  { %425 = vmatprep.subr.bf16.mxu0 %v458_v14 }
  0x17   :  { %402 = vmatpush3.bf16.msra.mxu1 %v457_v10 }
  0x18   :  { %426 = vmatpush3.bf16.msra.mxu0 %v458_v14  ;;  %403 = vmatprep.subr.bf16.mxu1 %v459_v18 }
  0x19   :  { %427 = vmatprep.subr.bf16.mxu0 %v460_v19 }
  0x1b   :  { %404 = vmatpush3.bf16.msra.mxu1 %v459_v18 }
  0x1c   :  { %428 = vmatpush3.bf16.msra.mxu0 %v460_v19  ;;  %405 = vmatprep.subr.bf16.mxu1 %v461_v20 }
  0x1d   :  { %429 = vmatprep.subr.bf16.mxu0 %v462_v21 }
  0x1f   :  { %406 = vmatpush3.bf16.msra.mxu1 %v461_v20 }
  0x20   :  { %430 = vmatpush3.bf16.msra.mxu0 %v462_v21 }
  0x22   :  { %408 = vmatmul.mubr.bf16.vlgmr.msra.gmra.mrb[0].mxu1 %v53_v30 }
  0x23   :  { %432 = vmatmul.mubr.bf16.vlgmr.msra.gmra.mrb[0].mxu0 %v24_v31  ;;  %411 = vmatprep.mubr.bf16.mxu1 %v54_v32 }
  0x24   :  { %435 = vmatprep.mubr.bf16.mxu0 %v25_v33 }
  0x2a   :  { %412 = vmatmul.mubr.bf16.gmra.mrb[4].mxu1 %v55_v38 }
  0x2b   :  { %436 = vmatmul.mubr.bf16.gmra.mrb[4].mxu0 %v26_v39 }
  0xf5   :  { %v409_v40 = vpop.f32.mrb[0].mxu1 }
  0xf6   :  { %v433_v41 = vpop.f32.mrb[0].mxu0  ;;  %v155_v43 = vpop.f32.mrb[1].mxu1 }
  0xf7   :  { %v277_v44 = vadd.f32 %v433_v41, %v409_v40  ;;  %v268_v45 = vpop.f32.mrb[1].mxu0  ;;  %v410_v46 = vpop.f32.mrb[2].mxu1 }
  0xf8   :  { %v269_v47 = vadd.f32 %v268_v45, %v155_v43  ;;  %v434_v48 = vpop.f32.mrb[2].mxu0  ;;  %v158_v49 = vpop.f32.mrb[3].mxu1 }
  0xf9   :  { %v308_v50 = vadd.f32 %v366_v42, %v277_v44  ;;  %v280_v51 = vadd.f32 %v434_v48, %v410_v46  ;;  %v271_v52 = vpop.f32.mrb[3].mxu0 }
  0xfa   :  { %v306_v53 = vadd.f32 %v366_v42, %v269_v47  ;;  %v272_v54 = vadd.f32 %v271_v52, %v158_v49 }
  0xfb   :  { %316 = vst [vmem:[%s609_s3 + $0x10] sm:$0xff] %v308_v50  ;;  %v309_v55 = vadd.f32 %v366_v42, %v280_v51 }
  0xfc   :  { %314 = vst [vmem:[%s609_s3] sm:$0xff] %v306_v53  ;;  %v307_v56 = vadd.f32 %v366_v42, %v272_v54 }
  0xfd   :  { %317 = vst [vmem:[%s609_s3 + $0x18] sm:$0xff] %v309_v55  ;;  %v413_v57 = vpop.f32.mrb[4].mxu1 }
  0xfe   :  { %315 = vst [vmem:[%s609_s3 + $0x8] sm:$0xff] %v307_v56  ;;  %v437_v58 = vpop.f32.mrb[4].mxu0  ;;  %v171_v59 = vpop.f32.mrb[5].mxu1 }
  0xff   :  { %v293_v60 = vadd.f32 %v437_v58, %v413_v57  ;;  %v284_v61 = vpop.f32.mrb[5].mxu0  ;;  %v414_v62 = vpop.f32.mrb[6].mxu1 }
 0x100   :  { %v285_v63 = vadd.f32 %v284_v61, %v171_v59  ;;  %v438_v0 = vpop.f32.mrb[6].mxu0  ;;  %v174_v1 = vpop.f32.mrb[7].mxu1 }
 0x101   :  { %v312_v2 = vadd.f32 %v366_v42, %v293_v60  ;;  %v296_v3 = vadd.f32 %v438_v0, %v414_v62  ;;  %v287_v4 = vpop.f32.mrb[7].mxu0 }
 0x102   :  { %v310_v5 = vadd.f32 %v366_v42, %v285_v63  ;;  %v288_v6 = vadd.f32 %v287_v4, %v174_v1 }
 0x103   :  { %320 = vst [vmem:[%s609_s3 + $0x30] sm:$0xff] %v312_v2  ;;  %v313_v7 = vadd.f32 %v366_v42, %v296_v3 }
 0x104   :  { %318 = vst [vmem:[%s609_s3 + $0x20] sm:$0xff] %v310_v5  ;;  %v311_v8 = vadd.f32 %v366_v42, %v288_v6 }
 0x105   :  { %321 = vst [vmem:[%s609_s3 + $0x38] sm:$0xff] %v313_v7 }
 0x106   :  { %319 = vst [vmem:[%s609_s3 + $0x28] sm:$0xff] %v311_v8 }

// kernel: bidirectional_lstm.3
= control target key start
LH: loop header
LB: loop body
LE: loop exit
PB: predicated region body
PF: predicated region fallthrough
CT: control target
= control target key end

     0   :  { %s726_s12 = smov 0   ;;  %s728_s13 = smov 0   ;;  %s861_s0 = inlined_call_operand.vmem [shape: bf16[64,16], index: 0, kind: input, shape index: {}]   ;;  %s862_s1 = inlined_call_operand.vmem [shape: bf16[2,16,512], index: 1, kind: input, shape index: {}]   ;;  %s863_s2 = inlined_call_operand.vmem [shape: f32[2,1,512], index: 2, kind: input, shape index: {}]   ;;  %s864_s3 = inlined_call_operand.vmem [shape: f32[2,64,512], index: 3, kind: output, shape index: {}]  }
   0x1   :  { %s730_s14 = smov 0  }
   0x2 LB: > { %s25_s15 = sadd.s32 1, %s699_s13  ;;  %p620_p0 = scmp.ge.s32.totalorder %s703_s14, 1  ;;  %s703_s14 = sphi %s730_s14, %s13_s14   ;;  %s699_s13 = sphi %s728_s13, %s866_s13   ;;  %s695_s12 = sphi %s726_s12, %s865_s12  }
   0x3   : > { %p27_p1 = scmp.ge.s32.totalorder %s25_s15, 2  ;;  %p171_p2 = scmp.lt.s32.totalorder %s703_s14, 3 }
   0x5   : > { %s868_s15 = smov (%p27_p1, %s25_s15), 0  ;;  %p172_p3 = pnand %p620_p0, %p171_p2 }
   0x6   : > { %p215_p4 = scmp.lt.s32.totalorder (!%p172_p3), %s695_s12, 1  ;;  %v705_v0 = vmov (!%p172_p3), 0   ;;  %v677_v5 = vld [vmem:[%s861_s0] sm:$0xff] (!%p172_p3)   ;;  %vm310_vm0 = vcmask (!%p172_p3), 130048   ;;  %v678_v6 = vld [vmem:[%s861_s0 + $0x8] sm:$0xff] (!%p172_p3)   ;;  %v679_v7 = vld [vmem:[%s861_s0 + $0x10] sm:$0xff] (!%p172_p3)   ;;  %v250_v9 = vlaneseq (!%p172_p3) }
   0x7   : > { %175 = sbr.rel (%p172_p3) target bundleno = 264 (0x108), region = 32  ;;  %355 = vmatprep.mubr.bf16.mxu0 (!%p172_p3), %v705_v0  ;;  %428 = vmatprep.mubr.bf16.mxu1 (!%p172_p3), %v705_v0  ;;  %v680_v8 = vld [vmem:[%s861_s0 + $0x18] sm:$0xff] (!%p172_p3)  }
   0x8   : > { %v251_v10 = vshrl.u32 (!%p172_p3), %v250_v9, 7 }
   0xa   : > { %v252_v11 = vsub.s32 (!%p172_p3), 0, %v251_v10  ;;  %v260_v12 = vsub.s32 (!%p172_p3), 2, %v251_v10  ;;  %v256_v14 = vsub.s32 (!%p172_p3), 1, %v251_v10  ;;  %v264_v15 = vsub.s32 (!%p172_p3), 3, %v251_v10 }
   0xe   : > { %s870_s12 = smov (!%p215_p4, %s695_s12), 1 }
   0xf   : > { %s644_s16 = sshll.u32 %s870_s12, 5  ;;  %s623_s28 = sshll.u32 %s870_s12, 2 }
  0x10   : > { %s219_s19 = scalar_lea.vmem %s862_s1, %s644_s16  ;;  %s223_s4 = scalar_lea.vmem %s863_s2, %s623_s28 }
  0x11   : > { %v671_v1 = vld [vmem:[%s219_s19 + $0x4] ss:$16 sps:$4 sm:$0xff]   ;;  %v673_v2 = vld [vmem:[%s219_s19 + $0xc] ss:$16 sps:$4 sm:$0xff]   ;;  %v675_v3 = vld [vmem:[%s219_s19] ss:$16 sps:$4 sm:$0xff]  }
  0x12   : > { %323 = vmatprep.subr.bf16.mxu0 %v671_v1  ;;  %v676_v4 = vld [vmem:[%s219_s19 + $0x8] ss:$16 sps:$4 sm:$0xff]   ;;  %396 = vmatprep.subr.bf16.mxu1 %v673_v2  ;;  %v248_v13 = vld [vmem:[%s223_s4] sm:$0xf]  ;;  %s645_s5 = sshll.u32 %s870_s12, 8 }
  0x13   : > { %324 = vmatpush1.bf16.msra.mxu0 %v675_v3  ;;  %397 = vmatpush1.bf16.msra.mxu1 %v676_v4  ;;  %v775_v16 = vrot.slane %v248_v13, %v252_v11  ;;  %v777_v17 = vrot.slane %v248_v13, %v260_v12  ;;  %v779_v18 = vrot.slane %v248_v13, %v256_v14  ;;  %s786_s8 = scalar_lea.vmem %s864_s3, %s645_s5 }
  0x14   : > { %v781_v19 = vrot.slane %v248_v13, %v264_v15 }
  0x16   : > { %634 = vmatmul.mubr.msk.bf16.vlgmr.msra.gmra.mrb[0].mxu0 %vm310_vm0, %v677_v5  ;;  %638 = vmatmul.mubr.msk.bf16.vlgmr.msra.gmra.mrb[0].mxu1 %vm310_vm0, %v677_v5 }
  0x17   : > { %365 = vmatprep.mubr.bf16.mxu0 %v705_v0  ;;  %438 = vmatprep.mubr.bf16.mxu1 %v705_v0 }
  0x1e   : > { %635 = vmatmul.mubr.msk.bf16.gmra.mrb[4].mxu0 %vm310_vm0, %v678_v6  ;;  %639 = vmatmul.mubr.msk.bf16.gmra.mrb[4].mxu1 %vm310_vm0, %v678_v6 }
  0x1f   : > { %375 = vmatprep.mubr.bf16.mxu0 %v705_v0  ;;  %448 = vmatprep.mubr.bf16.mxu1 %v705_v0 }
  0x26   : > { %636 = vmatmul.mubr.msk.bf16.gmra.mrb[8].mxu0 %vm310_vm0, %v679_v7  ;;  %640 = vmatmul.mubr.msk.bf16.gmra.mrb[8].mxu1 %vm310_vm0, %v679_v7 }
  0x27   : > { %385 = vmatprep.mubr.bf16.mxu0 %v705_v0  ;;  %458 = vmatprep.mubr.bf16.mxu1 %v705_v0 }
  0x2e   : > { %637 = vmatmul.mubr.msk.bf16.gmra.mrb[12].mxu0 %vm310_vm0, %v680_v8  ;;  %641 = vmatmul.mubr.msk.bf16.gmra.mrb[12].mxu1 %vm310_vm0, %v680_v8 }
  0xe9   : > { %v357_v20 = vpop.f32.mrb[0].mxu0  ;;  %v430_v21 = vpop.f32.mrb[0].mxu1 }
  0xea   : > { %v358_v22 = vadd.f32 %v357_v20, %v775_v16  ;;  %v431_v23 = vadd.f32 %v430_v21, %v777_v17  ;;  %v359_v24 = vpop.f32.mrb[1].mxu0  ;;  %v432_v25 = vpop.f32.mrb[1].mxu1 }
  0xeb   : > { %v360_v26 = vadd.f32 %v359_v24, %v779_v18  ;;  %v433_v27 = vadd.f32 %v432_v25, %v781_v19  ;;  %v361_v28 = vpop.f32.mrb[2].mxu0  ;;  %v434_v29 = vpop.f32.mrb[2].mxu1 }
  0xec   : > { %469 = vst [vmem:[%s786_s8] sm:$0xff] %v358_v22  ;;  %471 = vst [vmem:[%s786_s8 + $0x10] sm:$0xff] %v431_v23  ;;  %v362_v30 = vadd.f32 %v361_v28, %v775_v16  ;;  %v435_v31 = vadd.f32 %v434_v29, %v777_v17  ;;  %v363_v32 = vpop.f32.mrb[3].mxu0  ;;  %v436_v33 = vpop.f32.mrb[3].mxu1 }
  0xed   : > { %470 = vst [vmem:[%s786_s8 + $0x8] sm:$0xff] %v360_v26  ;;  %472 = vst [vmem:[%s786_s8 + $0x18] sm:$0xff] %v433_v27  ;;  %v364_v34 = vadd.f32 %v363_v32, %v779_v18  ;;  %v437_v35 = vadd.f32 %v436_v33, %v781_v19 }
  0xee   : > { %473 = vst [vmem:[%s786_s8 + $0x20] sm:$0xff] %v362_v30  ;;  %475 = vst [vmem:[%s786_s8 + $0x30] sm:$0xff] %v435_v31 }
  0xef   : > { %474 = vst [vmem:[%s786_s8 + $0x28] sm:$0xff] %v364_v34  ;;  %476 = vst [vmem:[%s786_s8 + $0x38] sm:$0xff] %v437_v35 }
  0xf1   : > { %v367_v36 = vpop.f32.mrb[4].mxu0  ;;  %v440_v37 = vpop.f32.mrb[4].mxu1 }
  0xf2   : > { %v368_v38 = vadd.f32 %v367_v36, %v775_v16  ;;  %v441_v39 = vadd.f32 %v440_v37, %v777_v17  ;;  %v369_v40 = vpop.f32.mrb[5].mxu0  ;;  %v442_v41 = vpop.f32.mrb[5].mxu1 }
  0xf3   : > { %v370_v42 = vadd.f32 %v369_v40, %v779_v18  ;;  %v443_v43 = vadd.f32 %v442_v41, %v781_v19  ;;  %v371_v44 = vpop.f32.mrb[6].mxu0  ;;  %v444_v45 = vpop.f32.mrb[6].mxu1 }
  0xf4   : > { %477 = vst [vmem:[%s786_s8 + $0x40] sm:$0xff] %v368_v38  ;;  %479 = vst [vmem:[%s786_s8 + $0x50] sm:$0xff] %v441_v39  ;;  %v372_v46 = vadd.f32 %v371_v44, %v775_v16  ;;  %v445_v47 = vadd.f32 %v444_v45, %v777_v17  ;;  %v373_v48 = vpop.f32.mrb[7].mxu0  ;;  %v446_v49 = vpop.f32.mrb[7].mxu1 }
  0xf5   : > { %478 = vst [vmem:[%s786_s8 + $0x48] sm:$0xff] %v370_v42  ;;  %480 = vst [vmem:[%s786_s8 + $0x58] sm:$0xff] %v443_v43  ;;  %v374_v50 = vadd.f32 %v373_v48, %v779_v18  ;;  %v447_v51 = vadd.f32 %v446_v49, %v781_v19 }
  0xf6   : > { %481 = vst [vmem:[%s786_s8 + $0x60] sm:$0xff] %v372_v46  ;;  %483 = vst [vmem:[%s786_s8 + $0x70] sm:$0xff] %v445_v47 }
  0xf7   : > { %482 = vst [vmem:[%s786_s8 + $0x68] sm:$0xff] %v374_v50  ;;  %484 = vst [vmem:[%s786_s8 + $0x78] sm:$0xff] %v447_v51 }
  0xf9   : > { %v377_v52 = vpop.f32.mrb[8].mxu0  ;;  %v450_v53 = vpop.f32.mrb[8].mxu1 }
  0xfa   : > { %v378_v54 = vadd.f32 %v377_v52, %v775_v16  ;;  %v451_v55 = vadd.f32 %v450_v53, %v777_v17  ;;  %v379_v56 = vpop.f32.mrb[9].mxu0  ;;  %v452_v57 = vpop.f32.mrb[9].mxu1 }
  0xfb   : > { %v380_v58 = vadd.f32 %v379_v56, %v779_v18  ;;  %v453_v59 = vadd.f32 %v452_v57, %v781_v19  ;;  %v381_v60 = vpop.f32.mrb[10].mxu0  ;;  %v454_v61 = vpop.f32.mrb[10].mxu1 }
  0xfc   : > { %485 = vst [vmem:[%s786_s8 + $0x80] sm:$0xff] %v378_v54  ;;  %487 = vst [vmem:[%s786_s8 + $0x90] sm:$0xff] %v451_v55  ;;  %v382_v62 = vadd.f32 %v381_v60, %v775_v16  ;;  %v455_v63 = vadd.f32 %v454_v61, %v777_v17  ;;  %v383_v0 = vpop.f32.mrb[11].mxu0  ;;  %v456_v1 = vpop.f32.mrb[11].mxu1 }
  0xfd   : > { %486 = vst [vmem:[%s786_s8 + $0x88] sm:$0xff] %v380_v58  ;;  %488 = vst [vmem:[%s786_s8 + $0x98] sm:$0xff] %v453_v59  ;;  %v384_v2 = vadd.f32 %v383_v0, %v779_v18  ;;  %v457_v3 = vadd.f32 %v456_v1, %v781_v19 }
  0xfe   : > { %489 = vst [vmem:[%s786_s8 + $0xa0] sm:$0xff] %v382_v62  ;;  %491 = vst [vmem:[%s786_s8 + $0xb0] sm:$0xff] %v455_v63 }
  0xff   : > { %490 = vst [vmem:[%s786_s8 + $0xa8] sm:$0xff] %v384_v2  ;;  %492 = vst [vmem:[%s786_s8 + $0xb8] sm:$0xff] %v457_v3 }
 0x101   : > { %v387_v4 = vpop.f32.mrb[12].mxu0  ;;  %v460_v5 = vpop.f32.mrb[12].mxu1 }
 0x102   : > { %v388_v6 = vadd.f32 %v387_v4, %v775_v16  ;;  %v461_v7 = vadd.f32 %v460_v5, %v777_v17  ;;  %v389_v8 = vpop.f32.mrb[13].mxu0  ;;  %v462_v9 = vpop.f32.mrb[13].mxu1 }
 0x103   : > { %v390_v10 = vadd.f32 %v389_v8, %v779_v18  ;;  %v463_v11 = vadd.f32 %v462_v9, %v781_v19  ;;  %v391_v12 = vpop.f32.mrb[14].mxu0  ;;  %v464_v13 = vpop.f32.mrb[14].mxu1 }
 0x104   : > { %493 = vst [vmem:[%s786_s8 + $0xc0] sm:$0xff] %v388_v6  ;;  %495 = vst [vmem:[%s786_s8 + $0xd0] sm:$0xff] %v461_v7  ;;  %v392_v14 = vadd.f32 %v391_v12, %v775_v16  ;;  %v465_v15 = vadd.f32 %v464_v13, %v777_v17  ;;  %v393_v20 = vpop.f32.mrb[15].mxu0  ;;  %v466_v21 = vpop.f32.mrb[15].mxu1 }
 0x105   : > { %494 = vst [vmem:[%s786_s8 + $0xc8] sm:$0xff] %v390_v10  ;;  %496 = vst [vmem:[%s786_s8 + $0xd8] sm:$0xff] %v463_v11  ;;  %v394_v22 = vadd.f32 %v393_v20, %v779_v18  ;;  %v467_v23 = vadd.f32 %v466_v21, %v781_v19 }
 0x106   : > { %497 = vst [vmem:[%s786_s8 + $0xe0] sm:$0xff] %v392_v14  ;;  %499 = vst [vmem:[%s786_s8 + $0xf0] sm:$0xff] %v465_v15 }
 0x107   : > { %498 = vst [vmem:[%s786_s8 + $0xe8] sm:$0xff] %v394_v22  ;;  %500 = vst [vmem:[%s786_s8 + $0xf8] sm:$0xff] %v467_v23 }
 0x108 PF: > { %s13_s14 = sadd.s32 1, %s703_s14   ;;  %s865_s12 = smov %s699_s13 }
 0x109   : > { %p10_p5 = scmp.ge.s32.totalorder %s13_s14, 4   ;;  %s866_s13 = smov %s868_s15 }
 0x10b   :  { %12 = sbr.rel (!%p10_p5) target bundleno = 2 (0x2), region = 68 }

// kernel: bidirectional_lstm.4
= control target key start
LH: loop header
LB: loop body
LE: loop exit
PB: predicated region body
PF: predicated region fallthrough
CT: control target
= control target key end

     0   :  { %s3587_s9 = smov 0   ;;  %s3589_s10 = smov 0   ;;  %s4164_s0 = inlined_call_operand.vmem [shape: f32[2,8,8,512], index: 0, kind: input, shape index: {}]   ;;  %s4165_s1 = inlined_call_operand.vmem [shape: bf16[2,128,512], index: 1, kind: input, shape index: {}]   ;;  %s4166_s2 = inlined_call_operand.vmem [shape: f32[2,8,8,128], index: 2, kind: output, shape index: {}]  }
   0x1   :  { %s3591_s11 = smov 0  }
   0x2 LB: > { %s24_s12 = sadd.s32 1, %s3564_s10  ;;  %p2954_p0 = scmp.ge.s32.totalorder %s3568_s11, 1  ;;  %s3568_s11 = sphi %s3591_s11, %s12_s11   ;;  %s3564_s10 = sphi %s3589_s10, %s4168_s10   ;;  %s3560_s9 = sphi %s3587_s9, %s4167_s9  }
   0x3   : > { %p26_p1 = scmp.ge.s32.totalorder %s24_s12, 2  ;;  %p168_p2 = scmp.lt.s32.totalorder %s3568_s11, 3 }
   0x5   : > { %s4170_s12 = smov (%p26_p1, %s24_s12), 0  ;;  %p169_p3 = pnand %p2954_p0, %p168_p2 }
   0x6   : > { %p217_p4 = scmp.lt.s32.totalorder (!%p169_p3), %s3560_s9, 1  ;;  %v3570_v0 = vmov (!%p169_p3), 0   ;;  %v3571_v33 = vmov (!%p169_p3), 0.0|0.0   ;;  %s3294_s18 = smul.u32 (!%p169_p3), 224, %s3560_s9 }
   0x7   : > { %172 = sbr.rel (%p169_p3) target bundleno = 2130 (0x852), region = 28  ;;  %496 = vmatprep.mubr.bf16.mxu0 (!%p169_p3), %v3570_v0  ;;  %537 = vmatprep.mubr.bf16.mxu1 (!%p169_p3), %v3570_v0  ;;  %s3123_s15 = sshll.u32 (!%p169_p3), %s3560_s9, 3 }
   0x8   : > { %s2998_s24 = smul.u32 (!%p169_p3), 56, %s3560_s9 }
   0x9   : > { %s2999_s29 = smul.u32 (!%p169_p3), 160, %s3560_s9 }
   0xa   : > { %s3039_s3 = smul.u32 (!%p169_p3), 40, %s3560_s9 }
   0xb   : > { %s3041_s5 = smul.u32 (!%p169_p3), 96, %s3560_s9 }
   0xc   : > { %s3081_s7 = smul.u32 (!%p169_p3), 24, %s3560_s9 }
   0xd   : > { %s3203_s25 = smul.u32 (!%p169_p3), 4294967272, %s3560_s9 }
   0xe   : > { %s3611_s13 = scalar_select %p217_p4, %s3560_s9, 1 }
  0x10   : > { %s3291_s14 = sshll.u32 %s3611_s13, 8  ;;  %s3293_s23 = sshll.u32 %s3611_s13, 6 }
  0x11   : > { %s3619_s17 = scalar_lea.vmem %s4165_s1, %s3291_s14  ;;  %s3791_s21 = scalar_lea.vmem %s4164_s0, %s3291_s14 }
  0x12   : > { %v3622_v1 = vld [vmem:[%s3619_s17 + $0x4] ss:$16 sps:$4 sm:$0xff]   ;;  %v3625_v2 = vld [vmem:[%s3619_s17] ss:$16 sps:$4 sm:$0xff]   ;;  %v3640_v6 = vld [vmem:[%s3619_s17 + $0xc] ss:$16 sps:$4 sm:$0xff]   ;;  %s298_s22 = scalar_lea.vmem %s3791_s21, %s3294_s18  ;;  %s3802_s27 = scalar_lea.vmem %s4166_s2, %s3293_s23 }
  0x13   : > { %464 = vmatprep.subr.bf16.mxu0 %v3622_v1  ;;  %v3629_v3 = vld [vmem:[%s3619_s17 + $0x24] ss:$16 sps:$4 sm:$0xff]   ;;  %v3633_v4 = vld [vmem:[%s3619_s17 + $0x20] ss:$16 sps:$4 sm:$0xff]   ;;  %v3643_v7 = vld [vmem:[%s3619_s17 + $0x8] ss:$16 sps:$4 sm:$0xff]   ;;  %505 = vmatprep.subr.bf16.mxu1 %v3640_v6  ;;  %s575_s28 = scalar_lea.vmem %s3802_s27, %s2998_s24  ;;  %s2859_s30 = scalar_lea.vmem %s3791_s21, %s2999_s29 }
  0x14   : > { %465 = vmatpush1.bf16.msra.mxu0 %v3625_v2  ;;  %v3637_v5 = vld [vmem:[%s3619_s17 + $0x44] ss:$16 sps:$4 sm:$0xff]   ;;  %v3647_v8 = vld [vmem:[%s3619_s17 + $0x40] ss:$16 sps:$4 sm:$0xff]   ;;  %506 = vmatpush1.bf16.msra.mxu1 %v3643_v7  ;;  %v3656_v10 = vld [vmem:[%s3619_s17 + $0x2c] ss:$16 sps:$4 sm:$0xff]   ;;  %s2863_s4 = scalar_lea.vmem %s3802_s27, %s3039_s3  ;;  %s2867_s6 = scalar_lea.vmem %s3791_s21, %s3041_s5 }
  0x15   : > { %466 = vmatprep.subr.bf16.mxu0 %v3629_v3  ;;  %v3652_v9 = vld [vmem:[%s3619_s17 + $0x64] ss:$16 sps:$4 sm:$0xff]   ;;  %v3659_v11 = vld [vmem:[%s3619_s17 + $0x28] ss:$16 sps:$4 sm:$0xff]   ;;  %507 = vmatprep.subr.bf16.mxu1 %v3656_v10  ;;  %v3664_v12 = vld [vmem:[%s3619_s17 + $0x60] ss:$16 sps:$4 sm:$0xff]   ;;  %s2871_s8 = scalar_lea.vmem %s3802_s27, %s3081_s7  ;;  %s2877_s16 = scalar_lea.vmem %s3802_s27, %s3123_s15 }
  0x16   : > { %v3667_v13 = vld [vmem:[%s3619_s17 + $0x84] ss:$16 sps:$4 sm:$0xff]   ;;  %v3670_v14 = vld [vmem:[%s3619_s17 + $0x4c] ss:$16 sps:$4 sm:$0xff]   ;;  %v3675_v15 = vld [vmem:[%s3619_s17 + $0x48] ss:$16 sps:$4 sm:$0xff]   ;;  %s2889_s26 = scalar_lea.vmem %s3802_s27, %s3203_s25 }
  0x17   : > { %v3679_v16 = vld [vmem:[%s3619_s17 + $0x6c] ss:$16 sps:$4 sm:$0xff]   ;;  %v3683_v17 = vld [vmem:[%s3619_s17 + $0x80] ss:$16 sps:$4 sm:$0xff]   ;;  %v3687_v18 = vld [vmem:[%s3619_s17 + $0xa4] ss:$16 sps:$4 sm:$0xff]  }
  0x18   : > { %467 = vmatpush1.bf16.msra.mxu0 %v3633_v4  ;;  %508 = vmatpush1.bf16.msra.mxu1 %v3659_v11  ;;  %v3691_v19 = vld [vmem:[%s3619_s17 + $0x68] ss:$16 sps:$4 sm:$0xff]   ;;  %v3695_v20 = vld [vmem:[%s3619_s17 + $0x8c] ss:$16 sps:$4 sm:$0xff]   ;;  %v3699_v21 = vld [vmem:[%s3619_s17 + $0xa0] ss:$16 sps:$4 sm:$0xff]  }
  0x19   : > { %468 = vmatprep.subr.bf16.mxu0 %v3637_v5  ;;  %509 = vmatprep.subr.bf16.mxu1 %v3670_v14  ;;  %v3702_v22 = vld [vmem:[%s3619_s17 + $0xc4] ss:$16 sps:$4 sm:$0xff]   ;;  %v3707_v23 = vld [vmem:[%s3619_s17 + $0x88] ss:$16 sps:$4 sm:$0xff]   ;;  %v3710_v24 = vld [vmem:[%s3619_s17 + $0xc0] ss:$16 sps:$4 sm:$0xff]  }
  0x1a   : > { %v3714_v25 = vld [vmem:[%s3619_s17 + $0xac] ss:$16 sps:$4 sm:$0xff]   ;;  %v3717_v26 = vld [vmem:[%s3619_s17 + $0xe4] ss:$16 sps:$4 sm:$0xff]   ;;  %v3720_v27 = vld [vmem:[%s3619_s17 + $0xa8] ss:$16 sps:$4 sm:$0xff]  }
  0x1b   : > { %v3724_v28 = vld [vmem:[%s3619_s17 + $0xcc] ss:$16 sps:$4 sm:$0xff]   ;;  %v3729_v29 = vld [vmem:[%s3619_s17 + $0xe0] ss:$16 sps:$4 sm:$0xff]   ;;  %v3733_v30 = vld [vmem:[%s3619_s17 + $0xc8] ss:$16 sps:$4 sm:$0xff]  }
  0x1c   : > { %469 = vmatpush1.bf16.msra.mxu0 %v3647_v8  ;;  %510 = vmatpush1.bf16.msra.mxu1 %v3675_v15  ;;  %v3737_v31 = vld [vmem:[%s3619_s17 + $0xec] ss:$16 sps:$4 sm:$0xff]   ;;  %v3745_v32 = vld [vmem:[%s3619_s17 + $0xe8] ss:$16 sps:$4 sm:$0xff]   ;;  %v299_v34 = vld [vmem:[%s298_s22] sm:$0xff]  ;;  %s3083_s13 = sshll.u32 %s3560_s9, 5 }
  0x1d   : > { %470 = vmatprep.subr.bf16.mxu0 %v3652_v9  ;;  %511 = vmatprep.subr.bf16.mxu1 %v3679_v16  ;;  %v300_v35 = vld [vmem:[%s298_s22 + $0x8] sm:$0xff]  ;;  %v302_v44 = vld [vmem:[%s298_s22 + $0x18] sm:$0xff]  ;;  %v301_v50 = vld [vmem:[%s298_s22 + $0x10] sm:$0xff]  ;;  %s2874_s14 = scalar_lea.vmem %s3791_s21, %s3083_s13  ;;  %s3163_s23 = smul.u32 4294967200, %s3560_s9 }
  0x1f   : > { %s2885_s24 = scalar_lea.vmem %s3791_s21, %s3163_s23 }
  0x20   : > { %471 = vmatpush1.bf16.msra.mxu0 %v3664_v12  ;;  %512 = vmatpush1.bf16.msra.mxu1 %v3691_v19 }
  0x21   : > { %472 = vmatprep.subr.bf16.mxu0 %v3667_v13  ;;  %513 = vmatprep.subr.bf16.mxu1 %v3695_v20 }
  0x24   : > { %473 = vmatpush1.bf16.msra.mxu0 %v3683_v17  ;;  %514 = vmatpush1.bf16.msra.mxu1 %v3707_v23 }
  0x25   : > { %474 = vmatprep.subr.bf16.mxu0 %v3687_v18  ;;  %515 = vmatprep.subr.bf16.mxu1 %v3714_v25 }
  0x28   : > { %475 = vmatpush1.bf16.msra.mxu0 %v3699_v21  ;;  %516 = vmatpush1.bf16.msra.mxu1 %v3720_v27 }
  0x29   : > { %476 = vmatprep.subr.bf16.mxu0 %v3702_v22  ;;  %517 = vmatprep.subr.bf16.mxu1 %v3724_v28 }
  0x2c   : > { %477 = vmatpush1.bf16.msra.mxu0 %v3710_v24  ;;  %518 = vmatpush1.bf16.msra.mxu1 %v3733_v30 }
  0x2d   : > { %478 = vmatprep.subr.bf16.mxu0 %v3717_v26  ;;  %519 = vmatprep.subr.bf16.mxu1 %v3737_v31 }
  0x30   : > { %479 = vmatpush1.bf16.msra.mxu0 %v3729_v29  ;;  %520 = vmatpush1.bf16.msra.mxu1 %v3745_v32 }
  0x31   : > { %779 = vmatprep.subr.bf16.mxu0 %v3622_v1  ;;  %820 = vmatprep.subr.bf16.mxu1 %v3640_v6 }
  0x33   : > { %497 = vmatmul.mubr.bf16.vlgmr.msra.gmra.mrb[0].mxu0 %v3571_v33  ;;  %538 = vmatmul.mubr.bf16.vlgmr.msra.gmra.mrb[0].mxu1 %v3571_v33 }
  0x34   : > { %780 = vmatpush1.bf16.msra.mxu0 %v3625_v2  ;;  %811 = vmatprep.mubr.bf16.mxu0 %v3570_v0 }
  0x35   : > { %781 = vmatprep.subr.bf16.mxu0 %v3629_v3  ;;  %821 = vmatpush1.bf16.msra.mxu1 %v3643_v7 }
  0x36   : > { %822 = vmatprep.subr.bf16.mxu1 %v3656_v10  ;;  %852 = vmatprep.mubr.bf16.mxu1 %v3570_v0 }
  0x38   : > { %782 = vmatpush1.bf16.msra.mxu0 %v3633_v4 }
  0x39   : > { %783 = vmatprep.subr.bf16.mxu0 %v3637_v5  ;;  %823 = vmatpush1.bf16.msra.mxu1 %v3659_v11 }
  0x3a   : > { %824 = vmatprep.subr.bf16.mxu1 %v3670_v14 }
  0x3c   : > { %784 = vmatpush1.bf16.msra.mxu0 %v3647_v8 }
  0x3d   : > { %785 = vmatprep.subr.bf16.mxu0 %v3652_v9  ;;  %825 = vmatpush1.bf16.msra.mxu1 %v3675_v15 }
  0x3e   : > { %826 = vmatprep.subr.bf16.mxu1 %v3679_v16 }
  0x40   : > { %786 = vmatpush1.bf16.msra.mxu0 %v3664_v12 }
  0x41   : > { %787 = vmatprep.subr.bf16.mxu0 %v3667_v13  ;;  %827 = vmatpush1.bf16.msra.mxu1 %v3691_v19 }
  0x42   : > { %828 = vmatprep.subr.bf16.mxu1 %v3695_v20 }
  0x44   : > { %788 = vmatpush1.bf16.msra.mxu0 %v3683_v17 }
  0x45   : > { %789 = vmatprep.subr.bf16.mxu0 %v3687_v18  ;;  %829 = vmatpush1.bf16.msra.mxu1 %v3707_v23 }
  0x46   : > { %830 = vmatprep.subr.bf16.mxu1 %v3714_v25 }
  0x48   : > { %790 = vmatpush1.bf16.msra.mxu0 %v3699_v21 }
  0x49   : > { %791 = vmatprep.subr.bf16.mxu0 %v3702_v22  ;;  %831 = vmatpush1.bf16.msra.mxu1 %v3720_v27 }
  0x4a   : > { %832 = vmatprep.subr.bf16.mxu1 %v3724_v28 }
  0x4c   : > { %792 = vmatpush1.bf16.msra.mxu0 %v3710_v24 }
  0x4d   : > { %793 = vmatprep.subr.bf16.mxu0 %v3717_v26  ;;  %833 = vmatpush1.bf16.msra.mxu1 %v3733_v30 }
  0x4e   : > { %834 = vmatprep.subr.bf16.mxu1 %v3737_v31 }
  0x50   : > { %794 = vmatpush1.bf16.msra.mxu0 %v3729_v29 }
  0x51   : > { %1094 = vmatprep.subr.bf16.mxu0 %v3622_v1  ;;  %835 = vmatpush1.bf16.msra.mxu1 %v3745_v32 }
  0x52   : > { %1135 = vmatprep.subr.bf16.mxu1 %v3640_v6 }
 0x106   : > { %v498_v36 = vpop.f32.mrb[0].mxu0  ;;  %v539_v45 = vpop.f32.mrb[0].mxu1 }
 0x107   : > { %v546_v37 = vadd.f32 %v498_v36, %v299_v34  ;;  %v500_v38 = vpop.f32.mrb[1].mxu0  ;;  %v541_v46 = vpop.f32.mrb[1].mxu1  ;;  %v548_v52 = vadd.f32 %v539_v45, %v301_v50 }
 0x108   : > { %v547_v39 = vadd.f32 %v500_v38, %v300_v35  ;;  %v502_v40 = vpop.f32.mrb[2].mxu0  ;;  %v549_v47 = vadd.f32 %v541_v46, %v302_v44  ;;  %v543_v48 = vpop.f32.mrb[2].mxu1  ;;  %v3000_v38 = vld [vmem:[%s2859_s30 + $0x20] sm:$0xff] }
 0x109   : > { %v2995_v41 = vmul.f32 -1.442695, %v546_v37  ;;  %v503_v42 = vpop.f32.mrb[3].mxu0  ;;  %v544_v49 = vpop.f32.mrb[3].mxu1 }
 0x10a   : > { %v2996_v43 = vmul.f32 -1.442695, %v547_v39  ;;  %v2997_v51 = vmul.f32 -1.442695, %v549_v47  ;;  %v3001_v39 = vld [vmem:[%s2859_s30 + $0x28] sm:$0xff] }
 0x10b   : > { %3418 = vpow2.f32 %v2995_v41 }
 0x10c   : > { %3420 = vpow2.f32 %v2996_v43 }
 0x10d   : > { %3422 = vpow2.f32 %v2997_v51 }
 0x10e   : > { %3424 = vtanh.f32 %v548_v52  ;;  %v3002_v52 = vld [vmem:[%s2859_s30 + $0x30] sm:$0xff] }
 0x115   : > { %v3419_v53 = vpop.eup %3418 }
 0x116   : > { %v3421_v54 = vpop.eup %3420  ;;  %v553_v55 = vadd.f32 1.0, %v3419_v53 }
 0x117   : > { %v559_v56 = vadd.f32 1.0, %v3421_v54  ;;  %v3423_v57 = vpop.eup %3422 }
 0x118   : > { %3426 = vrcp.f32 %v553_v55  ;;  %v3425_v58 = vpop.eup %3424  ;;  %v566_v60 = vadd.f32 1.0, %v3423_v57 }
 0x119   : > { %3428 = vrcp.f32 %v559_v56 }
 0x11a   : > { %3430 = vrcp.f32 %v566_v60 }
 0x122   : > { %v3427_v59 = vpop.eup %3426 }
 0x123   : > { %v3429_v61 = vpop.eup %3428  ;;  %v570_v62 = vmul.f32 %v3427_v59, %v3425_v58 }
 0x124   : > { %v569_v63 = vmul.f32 0.0, %v3429_v61  ;;  %v3431_v34 = vpop.eup %3430 }
 0x126   : > { %v3794_v33 = vadd.f32 %v570_v62, %v569_v63 }
 0x128   : > { %3432 = vtanh.f32 %v3794_v33 }
 0x132   : > { %v3433_v35 = vpop.eup %3432 }
 0x133   : > { %v573_v36 = vmul.f32 %v3433_v35, %v3431_v34 }
 0x135   : > { %576 = vst [vmem:[%s575_s28] sm:$0xff] %v573_v36  ;;  %v618_v37 = vpack.c.bf16 %v573_v36, %v573_v36  ;;  %s3205_s28 = smul.u32 4294967136, %s3560_s9 }
 0x137   : > { %812 = vmatmul.mubr.bf16.vlgmr.msra.gmra.mrb[4].mxu0 %v618_v37  ;;  %853 = vmatmul.mubr.bf16.vlgmr.msra.gmra.mrb[4].mxu1 %v618_v37  ;;  %s2893_s29 = scalar_lea.vmem %s3791_s21, %s3205_s28 }
 0x138   : > { %1095 = vmatpush1.bf16.msra.mxu0 %v3625_v2  ;;  %1136 = vmatpush1.bf16.msra.mxu1 %v3643_v7 }
 0x139   : > { %1096 = vmatprep.subr.bf16.mxu0 %v3629_v3  ;;  %1137 = vmatprep.subr.bf16.mxu1 %v3656_v10 }
 0x13a   : > { %1126 = vmatprep.mubr.bf16.mxu0 %v3570_v0  ;;  %1167 = vmatprep.mubr.bf16.mxu1 %v3570_v0 }
 0x13c   : > { %1097 = vmatpush1.bf16.msra.mxu0 %v3633_v4  ;;  %1138 = vmatpush1.bf16.msra.mxu1 %v3659_v11 }
 0x13d   : > { %1098 = vmatprep.subr.bf16.mxu0 %v3637_v5  ;;  %1139 = vmatprep.subr.bf16.mxu1 %v3670_v14 }
 0x140   : > { %1099 = vmatpush1.bf16.msra.mxu0 %v3647_v8  ;;  %1140 = vmatpush1.bf16.msra.mxu1 %v3675_v15 }
 0x141   : > { %1100 = vmatprep.subr.bf16.mxu0 %v3652_v9  ;;  %1141 = vmatprep.subr.bf16.mxu1 %v3679_v16 }
 0x144   : > { %1101 = vmatpush1.bf16.msra.mxu0 %v3664_v12  ;;  %1142 = vmatpush1.bf16.msra.mxu1 %v3691_v19 }
 0x145   : > { %1102 = vmatprep.subr.bf16.mxu0 %v3667_v13  ;;  %1143 = vmatprep.subr.bf16.mxu1 %v3695_v20 }
 0x148   : > { %1103 = vmatpush1.bf16.msra.mxu0 %v3683_v17  ;;  %1144 = vmatpush1.bf16.msra.mxu1 %v3707_v23 }
 0x149   : > { %1104 = vmatprep.subr.bf16.mxu0 %v3687_v18  ;;  %1145 = vmatprep.subr.bf16.mxu1 %v3714_v25 }
 0x14c   : > { %1105 = vmatpush1.bf16.msra.mxu0 %v3699_v21  ;;  %1146 = vmatpush1.bf16.msra.mxu1 %v3720_v27 }
 0x14d   : > { %1106 = vmatprep.subr.bf16.mxu0 %v3702_v22  ;;  %1147 = vmatprep.subr.bf16.mxu1 %v3724_v28 }
 0x150   : > { %1107 = vmatpush1.bf16.msra.mxu0 %v3710_v24  ;;  %1148 = vmatpush1.bf16.msra.mxu1 %v3733_v30 }
 0x151   : > { %1108 = vmatprep.subr.bf16.mxu0 %v3717_v26  ;;  %1149 = vmatprep.subr.bf16.mxu1 %v3737_v31 }
 0x154   : > { %1109 = vmatpush1.bf16.msra.mxu0 %v3729_v29  ;;  %1150 = vmatpush1.bf16.msra.mxu1 %v3745_v32 }
 0x155   : > { %1408 = vmatprep.subr.bf16.mxu0 %v3622_v1  ;;  %1449 = vmatprep.subr.bf16.mxu1 %v3640_v6  ;;  %v3003_v1 = vld [vmem:[%s2859_s30 + $0x38] sm:$0xff]  ;;  %s3245_s30 = smul.u32 4294967256, %s3560_s9 }
 0x157   : > { %s2897_s3 = scalar_lea.vmem %s3802_s27, %s3245_s30 }
 0x20a   : > { %v813_v40 = vpop.f32.mrb[4].mxu0  ;;  %v854_v41 = vpop.f32.mrb[4].mxu1 }
 0x20b   : > { %v861_v42 = vadd.f32 %v3000_v38, %v813_v40  ;;  %v815_v43 = vpop.f32.mrb[5].mxu0  ;;  %v856_v44 = vpop.f32.mrb[5].mxu1  ;;  %v863_v54 = vadd.f32 %v3002_v52, %v854_v41  ;;  %v3925_v52 = vld [vmem:[%s3619_s17 + $0x4c] ss:$16 sps:$4 sm:$0xff]  }
 0x20c   : > { %v862_v45 = vadd.f32 %v3001_v39, %v815_v43  ;;  %v817_v46 = vpop.f32.mrb[6].mxu0  ;;  %v858_v47 = vpop.f32.mrb[6].mxu1  ;;  %v864_v6 = vadd.f32 %v3003_v1, %v856_v44  ;;  %v3915_v1 = vld [vmem:[%s3619_s17 + $0x28] ss:$16 sps:$4 sm:$0xff]  }
 0x20d   : > { %v3036_v48 = vmul.f32 -1.442695, %v861_v42  ;;  %v818_v49 = vpop.f32.mrb[7].mxu0  ;;  %v859_v50 = vpop.f32.mrb[7].mxu1  ;;  %v3893_v46 = vld [vmem:[%s3619_s17 + $0xc] ss:$16 sps:$4 sm:$0xff]  }
 0x20e   : > { %v3037_v51 = vmul.f32 -1.442695, %v862_v45  ;;  %v3038_v53 = vmul.f32 -1.442695, %v864_v6  ;;  %v3890_v45 = vld [vmem:[%s3619_s17 + $0x4] ss:$16 sps:$4 sm:$0xff]  }
 0x20f   : > { %3434 = vpow2.f32 %v3036_v48  ;;  %v3896_v47 = vld [vmem:[%s3619_s17] ss:$16 sps:$4 sm:$0xff]   ;;  %v3899_v48 = vld [vmem:[%s3619_s17 + $0x8] ss:$16 sps:$4 sm:$0xff]   ;;  %v3906_v49 = vld [vmem:[%s3619_s17 + $0x24] ss:$16 sps:$4 sm:$0xff]  }
 0x210   : > { %3436 = vpow2.f32 %v3037_v51  ;;  %v3909_v50 = vld [vmem:[%s3619_s17 + $0x2c] ss:$16 sps:$4 sm:$0xff]   ;;  %v3912_v51 = vld [vmem:[%s3619_s17 + $0x20] ss:$16 sps:$4 sm:$0xff]   ;;  %v3922_v6 = vld [vmem:[%s3619_s17 + $0x44] ss:$16 sps:$4 sm:$0xff]  }
 0x211   : > { %3438 = vpow2.f32 %v3038_v53  ;;  %v3928_v53 = vld [vmem:[%s3619_s17 + $0x40] ss:$16 sps:$4 sm:$0xff]  }
 0x212   : > { %3440 = vtanh.f32 %v863_v54  ;;  %v3931_v54 = vld [vmem:[%s3619_s17 + $0x48] ss:$16 sps:$4 sm:$0xff]  }
 0x219   : > { %v3435_v55 = vpop.eup %3434 }
 0x21a   : > { %v3437_v56 = vpop.eup %3436  ;;  %v868_v57 = vadd.f32 1.0, %v3435_v55  ;;  %v3938_v55 = vld [vmem:[%s3619_s17 + $0x64] ss:$16 sps:$4 sm:$0xff]  }
 0x21b   : > { %v874_v58 = vadd.f32 1.0, %v3437_v56  ;;  %v3439_v59 = vpop.eup %3438  ;;  %v3941_v56 = vld [vmem:[%s3619_s17 + $0x6c] ss:$16 sps:$4 sm:$0xff]  }
 0x21c   : > { %3442 = vrcp.f32 %v868_v57  ;;  %v3441_v60 = vpop.eup %3440  ;;  %v881_v34 = vadd.f32 1.0, %v3439_v59  ;;  %v3944_v57 = vld [vmem:[%s3619_s17 + $0x60] ss:$16 sps:$4 sm:$0xff]   ;;  %v3954_v59 = vld [vmem:[%s3619_s17 + $0x84] ss:$16 sps:$4 sm:$0xff]  }
 0x21d   : > { %3444 = vrcp.f32 %v874_v58  ;;  %v3947_v58 = vld [vmem:[%s3619_s17 + $0x68] ss:$16 sps:$4 sm:$0xff]  }
 0x21e   : > { %3446 = vrcp.f32 %v881_v34  ;;  %v3973_v34 = vld [vmem:[%s3619_s17 + $0xa0] ss:$16 sps:$4 sm:$0xff]  }
 0x226   : > { %v3443_v61 = vpop.eup %3442 }
 0x227   : > { %v3445_v62 = vpop.eup %3444  ;;  %v885_v63 = vmul.f32 %v3443_v61, %v3441_v60  ;;  %v3957_v60 = vld [vmem:[%s3619_s17 + $0x8c] ss:$16 sps:$4 sm:$0xff]   ;;  %v3960_v61 = vld [vmem:[%s3619_s17 + $0x80] ss:$16 sps:$4 sm:$0xff]  }
 0x228   : > { %v884_v35 = vmul.f32 %v3445_v62, %v3794_v33  ;;  %v3447_v37 = vpop.eup %3446  ;;  %v3963_v62 = vld [vmem:[%s3619_s17 + $0x88] ss:$16 sps:$4 sm:$0xff]  }
 0x22a   : > { %v3842_v36 = vadd.f32 %v885_v63, %v884_v35  ;;  %v3968_v63 = vld [vmem:[%s3619_s17 + $0xa4] ss:$16 sps:$4 sm:$0xff]   ;;  %v3976_v35 = vld [vmem:[%s3619_s17 + $0xa8] ss:$16 sps:$4 sm:$0xff]  }
 0x22c   : > { %3448 = vtanh.f32 %v3842_v36 }
 0x236   : > { %v3449_v38 = vpop.eup %3448 }
 0x237   : > { %v888_v39 = vmul.f32 %v3449_v38, %v3447_v37  ;;  %v3983_v37 = vld [vmem:[%s3619_s17 + $0xc4] ss:$16 sps:$4 sm:$0xff]   ;;  %v3986_v38 = vld [vmem:[%s3619_s17 + $0xcc] ss:$16 sps:$4 sm:$0xff]  }
 0x239   : > { %3040 = vst [vmem:[%s2863_s4 + $0x8] sm:$0xff] %v888_v39  ;;  %v933_v40 = vpack.c.bf16 %v888_v39, %v888_v39  ;;  %v3992_v39 = vld [vmem:[%s3619_s17 + $0xc0] ss:$16 sps:$4 sm:$0xff]   ;;  %s3247_s4 = smul.u32 4294967072, %s3560_s9 }
 0x23b   : > { %1127 = vmatmul.mubr.bf16.vlgmr.msra.gmra.mrb[8].mxu0 %v933_v40  ;;  %1168 = vmatmul.mubr.bf16.vlgmr.msra.gmra.mrb[8].mxu1 %v933_v40  ;;  %v3995_v40 = vld [vmem:[%s3619_s17 + $0xc8] ss:$16 sps:$4 sm:$0xff]   ;;  %s2901_s5 = scalar_lea.vmem %s3791_s21, %s3247_s4 }
 0x23c   : > { %1409 = vmatpush1.bf16.msra.mxu0 %v3625_v2  ;;  %1450 = vmatpush1.bf16.msra.mxu1 %v3643_v7  ;;  %v3042_v2 = vld [vmem:[%s2867_s6 + $0x40] sm:$0xff] }
 0x23d   : > { %1410 = vmatprep.subr.bf16.mxu0 %v3629_v3  ;;  %1451 = vmatprep.subr.bf16.mxu1 %v3656_v10  ;;  %v3043_v3 = vld [vmem:[%s2867_s6 + $0x48] sm:$0xff] }
 0x23e   : > { %1440 = vmatprep.mubr.bf16.mxu0 %v3570_v0  ;;  %1481 = vmatprep.mubr.bf16.mxu1 %v3570_v0 }
 0x240   : > { %1411 = vmatpush1.bf16.msra.mxu0 %v3633_v4  ;;  %1452 = vmatpush1.bf16.msra.mxu1 %v3659_v11 }
 0x241   : > { %1412 = vmatprep.subr.bf16.mxu0 %v3637_v5  ;;  %1453 = vmatprep.subr.bf16.mxu1 %v3670_v14 }
 0x244   : > { %1413 = vmatpush1.bf16.msra.mxu0 %v3647_v8  ;;  %1454 = vmatpush1.bf16.msra.mxu1 %v3675_v15 }
 0x245   : > { %1414 = vmatprep.subr.bf16.mxu0 %v3652_v9  ;;  %1455 = vmatprep.subr.bf16.mxu1 %v3679_v16 }
 0x248   : > { %1415 = vmatpush1.bf16.msra.mxu0 %v3664_v12  ;;  %1456 = vmatpush1.bf16.msra.mxu1 %v3691_v19  ;;  %v3044_v19 = vld [vmem:[%s2867_s6 + $0x50] sm:$0xff] }
 0x249   : > { %1416 = vmatprep.subr.bf16.mxu0 %v3667_v13  ;;  %1457 = vmatprep.subr.bf16.mxu1 %v3695_v20 }
 0x24c   : > { %1417 = vmatpush1.bf16.msra.mxu0 %v3683_v17  ;;  %1458 = vmatpush1.bf16.msra.mxu1 %v3707_v23  ;;  %v3045_v17 = vld [vmem:[%s2867_s6 + $0x58] sm:$0xff] }
 0x24d   : > { %1418 = vmatprep.subr.bf16.mxu0 %v3687_v18  ;;  %1459 = vmatprep.subr.bf16.mxu1 %v3714_v25 }
 0x250   : > { %1419 = vmatpush1.bf16.msra.mxu0 %v3699_v21  ;;  %1460 = vmatpush1.bf16.msra.mxu1 %v3720_v27 }
 0x251   : > { %1420 = vmatprep.subr.bf16.mxu0 %v3702_v22  ;;  %1461 = vmatprep.subr.bf16.mxu1 %v3724_v28 }
 0x254   : > { %1421 = vmatpush1.bf16.msra.mxu0 %v3710_v24  ;;  %1462 = vmatpush1.bf16.msra.mxu1 %v3733_v30 }
 0x255   : > { %1422 = vmatprep.subr.bf16.mxu0 %v3717_v26  ;;  %1463 = vmatprep.subr.bf16.mxu1 %v3737_v31 }
 0x258   : > { %1423 = vmatpush1.bf16.msra.mxu0 %v3729_v29  ;;  %1464 = vmatpush1.bf16.msra.mxu1 %v3745_v32 }
 0x259   : > { %1722 = vmatprep.subr.bf16.mxu0 %v3890_v45  ;;  %1763 = vmatprep.subr.bf16.mxu1 %v3893_v46 }
 0x30e   : > { %v1128_v4 = vpop.f32.mrb[8].mxu0  ;;  %v1169_v5 = vpop.f32.mrb[8].mxu1 }
 0x30f   : > { %v1176_v7 = vadd.f32 %v3042_v2, %v1128_v4  ;;  %v1130_v8 = vpop.f32.mrb[9].mxu0  ;;  %v1171_v9 = vpop.f32.mrb[9].mxu1  ;;  %v1178_v21 = vadd.f32 %v3044_v19, %v1169_v5  ;;  %v4000_v2 = vld [vmem:[%s3619_s17 + $0xe4] ss:$16 sps:$4 sm:$0xff]   ;;  %v4008_v4 = vld [vmem:[%s3619_s17 + $0xe0] ss:$16 sps:$4 sm:$0xff]  }
 0x310   : > { %v1177_v10 = vadd.f32 %v3043_v3, %v1130_v8  ;;  %v1132_v11 = vpop.f32.mrb[10].mxu0  ;;  %v1173_v12 = vpop.f32.mrb[10].mxu1  ;;  %v1179_v18 = vadd.f32 %v3045_v17, %v1171_v9  ;;  %v4003_v3 = vld [vmem:[%s3619_s17 + $0xec] ss:$16 sps:$4 sm:$0xff]   ;;  %v4011_v5 = vld [vmem:[%s3619_s17 + $0xe8] ss:$16 sps:$4 sm:$0xff]  }
 0x311   : > { %v3078_v13 = vmul.f32 -1.442695, %v1176_v7  ;;  %v1133_v14 = vpop.f32.mrb[11].mxu0  ;;  %v1174_v15 = vpop.f32.mrb[11].mxu1  ;;  %v3084_v7 = vld [vmem:[%s2874_s14 + $0x60] sm:$0xff]  ;;  %v3085_v8 = vld [vmem:[%s2874_s14 + $0x68] sm:$0xff] }
 0x312   : > { %v3079_v16 = vmul.f32 -1.442695, %v1177_v10  ;;  %v3080_v20 = vmul.f32 -1.442695, %v1179_v18 }
 0x313   : > { %3450 = vpow2.f32 %v3078_v13 }
 0x314   : > { %3452 = vpow2.f32 %v3079_v16 }
 0x315   : > { %3454 = vpow2.f32 %v3080_v20 }
 0x316   : > { %3456 = vtanh.f32 %v1178_v21  ;;  %v3087_v21 = vld [vmem:[%s2874_s14 + $0x78] sm:$0xff] }
 0x31d   : > { %v3451_v22 = vpop.eup %3450 }
 0x31e   : > { %v3453_v23 = vpop.eup %3452  ;;  %v1183_v24 = vadd.f32 1.0, %v3451_v22 }
 0x31f   : > { %v1189_v25 = vadd.f32 1.0, %v3453_v23  ;;  %v3455_v26 = vpop.eup %3454  ;;  %v3086_v23 = vld [vmem:[%s2874_s14 + $0x70] sm:$0xff] }
 0x320   : > { %3458 = vrcp.f32 %v1183_v24  ;;  %v3457_v27 = vpop.eup %3456  ;;  %v1196_v31 = vadd.f32 1.0, %v3455_v26 }
 0x321   : > { %3460 = vrcp.f32 %v1189_v25 }
 0x322   : > { %3462 = vrcp.f32 %v1196_v31 }
 0x32a   : > { %v3459_v28 = vpop.eup %3458 }
 0x32b   : > { %v3461_v29 = vpop.eup %3460  ;;  %v1200_v30 = vmul.f32 %v3459_v28, %v3457_v27 }
 0x32c   : > { %v1199_v32 = vmul.f32 %v3461_v29, %v3842_v36  ;;  %v3463_v41 = vpop.eup %3462  ;;  %v3979_v36 = vld [vmem:[%s3619_s17 + $0xac] ss:$16 sps:$4 sm:$0xff]   ;;  %s1521_s17 = ssub.s32 4, %s3560_s9 }
 0x32d   : > { %s3295_s18 = sshll.u32 %s1521_s17, 5  ;;  %s3162_s20 = sshll.u32 %s1521_s17, 3 }
 0x32e   : > { %v3882_v33 = vadd.f32 %v1200_v30, %v1199_v32  ;;  %s1556_s19 = scalar_lea.vmem %s3791_s21, %s3295_s18  ;;  %s1833_s22 = scalar_lea.vmem %s3802_s27, %s3162_s20 }
 0x32f   : > { %s3287_s21 = smul.u32 4294967240, %s3560_s9 }
 0x330   : > { %3464 = vtanh.f32 %v3882_v33 }
 0x331   : > { %s2905_s6 = scalar_lea.vmem %s3802_s27, %s3287_s21 }
 0x33a   : > { %v3465_v42 = vpop.eup %3464 }
 0x33b   : > { %v1203_v43 = vmul.f32 %v3465_v42, %v3463_v41 }
 0x33d   : > { %3082 = vst [vmem:[%s2871_s8 + $0x10] sm:$0xff] %v1203_v43  ;;  %v1247_v44 = vpack.c.bf16 %v1203_v43, %v1203_v43 }
 0x33f   : > { %1441 = vmatmul.mubr.bf16.vlgmr.msra.gmra.mrb[12].mxu0 %v1247_v44  ;;  %1482 = vmatmul.mubr.bf16.vlgmr.msra.gmra.mrb[12].mxu1 %v1247_v44 }
 0x340   : > { %1754 = vmatprep.mubr.bf16.mxu0 %v3570_v0  ;;  %1795 = vmatprep.mubr.bf16.mxu1 %v3570_v0 }
 0x341   : > { %1723 = vmatpush1.bf16.msra.mxu0 %v3896_v47  ;;  %1764 = vmatpush1.bf16.msra.mxu1 %v3899_v48 }
 0x342   : > { %1724 = vmatprep.subr.bf16.mxu0 %v3906_v49  ;;  %1765 = vmatprep.subr.bf16.mxu1 %v3909_v50 }
 0x345   : > { %1725 = vmatpush1.bf16.msra.mxu0 %v3912_v51  ;;  %1766 = vmatpush1.bf16.msra.mxu1 %v3915_v1 }
 0x346   : > { %1726 = vmatprep.subr.bf16.mxu0 %v3922_v6  ;;  %1767 = vmatprep.subr.bf16.mxu1 %v3925_v52 }
 0x349   : > { %1727 = vmatpush1.bf16.msra.mxu0 %v3928_v53  ;;  %1768 = vmatpush1.bf16.msra.mxu1 %v3931_v54 }
 0x34a   : > { %1728 = vmatprep.subr.bf16.mxu0 %v3938_v55  ;;  %1769 = vmatprep.subr.bf16.mxu1 %v3941_v56 }
 0x34d   : > { %1729 = vmatpush1.bf16.msra.mxu0 %v3944_v57  ;;  %1770 = vmatpush1.bf16.msra.mxu1 %v3947_v58 }
 0x34e   : > { %1730 = vmatprep.subr.bf16.mxu0 %v3954_v59  ;;  %1771 = vmatprep.subr.bf16.mxu1 %v3957_v60 }
 0x351   : > { %1731 = vmatpush1.bf16.msra.mxu0 %v3960_v61  ;;  %1772 = vmatpush1.bf16.msra.mxu1 %v3963_v62 }
 0x352   : > { %1732 = vmatprep.subr.bf16.mxu0 %v3968_v63  ;;  %1773 = vmatprep.subr.bf16.mxu1 %v3979_v36 }
 0x355   : > { %1733 = vmatpush1.bf16.msra.mxu0 %v3973_v34  ;;  %1774 = vmatpush1.bf16.msra.mxu1 %v3976_v35 }
 0x356   : > { %1734 = vmatprep.subr.bf16.mxu0 %v3983_v37  ;;  %1775 = vmatprep.subr.bf16.mxu1 %v3986_v38 }
 0x359   : > { %1735 = vmatpush1.bf16.msra.mxu0 %v3992_v39  ;;  %1776 = vmatpush1.bf16.msra.mxu1 %v3995_v40 }
 0x35a   : > { %1736 = vmatprep.subr.bf16.mxu0 %v4000_v2  ;;  %1777 = vmatprep.subr.bf16.mxu1 %v4003_v3 }
 0x35d   : > { %1737 = vmatpush1.bf16.msra.mxu0 %v4008_v4  ;;  %1778 = vmatpush1.bf16.msra.mxu1 %v4011_v5 }
 0x35e   : > { %2037 = vmatprep.subr.bf16.mxu0 %v3890_v45  ;;  %2078 = vmatprep.subr.bf16.mxu1 %v3893_v46 }
 0x412   : > { %v1442_v9 = vpop.f32.mrb[12].mxu0  ;;  %v1483_v10 = vpop.f32.mrb[12].mxu1 }
 0x413   : > { %v1490_v11 = vadd.f32 %v3084_v7, %v1442_v9  ;;  %v1444_v12 = vpop.f32.mrb[13].mxu0  ;;  %v1485_v13 = vpop.f32.mrb[13].mxu1  ;;  %v1492_v25 = vadd.f32 %v3086_v23, %v1483_v10 }
 0x414   : > { %v1491_v14 = vadd.f32 %v3085_v8, %v1444_v12  ;;  %v1446_v15 = vpop.f32.mrb[14].mxu0  ;;  %v1487_v16 = vpop.f32.mrb[14].mxu1  ;;  %v1493_v22 = vadd.f32 %v3087_v21, %v1485_v13  ;;  %v1558_v12 = vld [vmem:[%s1556_s19 + $0x8] sm:$0xff] }
 0x415   : > { %v3120_v17 = vmul.f32 -1.442695, %v1490_v11  ;;  %v1447_v18 = vpop.f32.mrb[15].mxu0  ;;  %v1488_v19 = vpop.f32.mrb[15].mxu1 }
 0x416   : > { %v3121_v20 = vmul.f32 -1.442695, %v1491_v14  ;;  %v3122_v24 = vmul.f32 -1.442695, %v1493_v22 }
 0x417   : > { %3466 = vpow2.f32 %v3120_v17 }
 0x418   : > { %3468 = vpow2.f32 %v3121_v20 }
 0x419   : > { %3470 = vpow2.f32 %v3122_v24 }
 0x41a   : > { %3472 = vtanh.f32 %v1492_v25  ;;  %v1560_v25 = vld [vmem:[%s1556_s19 + $0x18] sm:$0xff] }
 0x421   : > { %v3467_v26 = vpop.eup %3466 }
 0x422   : > { %v3469_v27 = vpop.eup %3468  ;;  %v1497_v28 = vadd.f32 1.0, %v3467_v26 }
 0x423   : > { %v1503_v29 = vadd.f32 1.0, %v3469_v27  ;;  %v3471_v30 = vpop.eup %3470  ;;  %v1559_v27 = vld [vmem:[%s1556_s19 + $0x10] sm:$0xff] }
 0x424   : > { %3474 = vrcp.f32 %v1497_v28  ;;  %v3473_v31 = vpop.eup %3472  ;;  %v1510_v43 = vadd.f32 1.0, %v3471_v30 }
 0x425   : > { %3476 = vrcp.f32 %v1503_v29 }
 0x426   : > { %3478 = vrcp.f32 %v1510_v43 }
 0x42e   : > { %v3475_v32 = vpop.eup %3474 }
 0x42f   : > { %v3477_v41 = vpop.eup %3476  ;;  %v1514_v42 = vmul.f32 %v3475_v32, %v3473_v31 }
 0x430   : > { %v1513_v44 = vmul.f32 %v3477_v41, %v3882_v33  ;;  %v3479_v8 = vpop.eup %3478  ;;  %v1557_v33 = vld [vmem:[%s1556_s19] sm:$0xff] }
 0x432   : > { %v4022_v7 = vadd.f32 %v1514_v42, %v1513_v44 }
 0x434   : > { %3480 = vtanh.f32 %v4022_v7 }
 0x43e   : > { %v3481_v9 = vpop.eup %3480 }
 0x43f   : > { %v1517_v10 = vmul.f32 %v3481_v9, %v3479_v8 }
 0x441   : > { %3124 = vst [vmem:[%s2877_s16 + $0x18] sm:$0xff] %v1517_v10  ;;  %v1561_v11 = vpack.c.bf16 %v1517_v10, %v1517_v10 }
 0x443   : > { %1755 = vmatmul.mubr.bf16.vlgmr.msra.gmra.mrb[16].mxu0 %v1561_v11  ;;  %1796 = vmatmul.mubr.bf16.vlgmr.msra.gmra.mrb[16].mxu1 %v1561_v11 }
 0x444   : > { %2038 = vmatpush1.bf16.msra.mxu0 %v3896_v47  ;;  %2079 = vmatpush1.bf16.msra.mxu1 %v3899_v48 }
 0x445   : > { %2039 = vmatprep.subr.bf16.mxu0 %v3906_v49  ;;  %2080 = vmatprep.subr.bf16.mxu1 %v3909_v50 }
 0x446   : > { %2069 = vmatprep.mubr.bf16.mxu0 %v3570_v0  ;;  %2110 = vmatprep.mubr.bf16.mxu1 %v3570_v0 }
 0x448   : > { %2040 = vmatpush1.bf16.msra.mxu0 %v3912_v51  ;;  %2081 = vmatpush1.bf16.msra.mxu1 %v3915_v1 }
 0x449   : > { %2041 = vmatprep.subr.bf16.mxu0 %v3922_v6  ;;  %2082 = vmatprep.subr.bf16.mxu1 %v3925_v52 }
 0x44c   : > { %2042 = vmatpush1.bf16.msra.mxu0 %v3928_v53  ;;  %2083 = vmatpush1.bf16.msra.mxu1 %v3931_v54 }
 0x44d   : > { %2043 = vmatprep.subr.bf16.mxu0 %v3938_v55  ;;  %2084 = vmatprep.subr.bf16.mxu1 %v3941_v56 }
 0x450   : > { %2044 = vmatpush1.bf16.msra.mxu0 %v3944_v57  ;;  %2085 = vmatpush1.bf16.msra.mxu1 %v3947_v58 }
 0x451   : > { %2045 = vmatprep.subr.bf16.mxu0 %v3954_v59  ;;  %2086 = vmatprep.subr.bf16.mxu1 %v3957_v60 }
 0x454   : > { %2046 = vmatpush1.bf16.msra.mxu0 %v3960_v61  ;;  %2087 = vmatpush1.bf16.msra.mxu1 %v3963_v62 }
 0x455   : > { %2047 = vmatprep.subr.bf16.mxu0 %v3968_v63  ;;  %2088 = vmatprep.subr.bf16.mxu1 %v3979_v36 }
 0x458   : > { %2048 = vmatpush1.bf16.msra.mxu0 %v3973_v34  ;;  %2089 = vmatpush1.bf16.msra.mxu1 %v3976_v35 }
 0x459   : > { %2049 = vmatprep.subr.bf16.mxu0 %v3983_v37  ;;  %2090 = vmatprep.subr.bf16.mxu1 %v3986_v38 }
 0x45c   : > { %2050 = vmatpush1.bf16.msra.mxu0 %v3992_v39  ;;  %2091 = vmatpush1.bf16.msra.mxu1 %v3995_v40 }
 0x45d   : > { %2051 = vmatprep.subr.bf16.mxu0 %v4000_v2  ;;  %2092 = vmatprep.subr.bf16.mxu1 %v4003_v3 }
 0x460   : > { %2052 = vmatpush1.bf16.msra.mxu0 %v4008_v4  ;;  %2093 = vmatpush1.bf16.msra.mxu1 %v4011_v5 }
 0x461   : > { %2352 = vmatprep.subr.bf16.mxu0 %v3890_v45  ;;  %2393 = vmatprep.subr.bf16.mxu1 %v3893_v46 }
 0x516   : > { %v1756_v13 = vpop.f32.mrb[16].mxu0  ;;  %v1797_v14 = vpop.f32.mrb[16].mxu1 }
 0x517   : > { %v1804_v15 = vadd.f32 %v1756_v13, %v1557_v33  ;;  %v1758_v16 = vpop.f32.mrb[17].mxu0  ;;  %v1799_v17 = vpop.f32.mrb[17].mxu1  ;;  %v1806_v29 = vadd.f32 %v1797_v14, %v1559_v27 }
 0x518   : > { %v1805_v18 = vadd.f32 %v1758_v16, %v1558_v12  ;;  %v1760_v19 = vpop.f32.mrb[18].mxu0  ;;  %v1801_v20 = vpop.f32.mrb[18].mxu1  ;;  %v1807_v26 = vadd.f32 %v1799_v17, %v1560_v25  ;;  %v3165_v16 = vld [vmem:[%s2885_s24 + $0xa8] sm:$0xff] }
 0x519   : > { %v3159_v21 = vmul.f32 -1.442695, %v1804_v15  ;;  %v1761_v22 = vpop.f32.mrb[19].mxu0  ;;  %v1802_v23 = vpop.f32.mrb[19].mxu1 }
 0x51a   : > { %v3160_v24 = vmul.f32 -1.442695, %v1805_v18  ;;  %v3161_v28 = vmul.f32 -1.442695, %v1807_v26 }
 0x51b   : > { %3482 = vpow2.f32 %v3159_v21 }
 0x51c   : > { %3484 = vpow2.f32 %v3160_v24 }
 0x51d   : > { %3486 = vpow2.f32 %v3161_v28 }
 0x51e   : > { %3488 = vtanh.f32 %v1806_v29  ;;  %v3166_v29 = vld [vmem:[%s2885_s24 + $0xb0] sm:$0xff] }
 0x525   : > { %v3483_v30 = vpop.eup %3482 }
 0x526   : > { %v3485_v31 = vpop.eup %3484  ;;  %v1811_v32 = vadd.f32 1.0, %v3483_v30 }
 0x527   : > { %v1817_v41 = vadd.f32 1.0, %v3485_v31  ;;  %v3487_v42 = vpop.eup %3486 }
 0x528   : > { %3490 = vrcp.f32 %v1811_v32  ;;  %v3489_v43 = vpop.eup %3488  ;;  %v1824_v10 = vadd.f32 1.0, %v3487_v42 }
 0x529   : > { %3492 = vrcp.f32 %v1817_v41 }
 0x52a   : > { %3494 = vrcp.f32 %v1824_v10 }
 0x532   : > { %v3491_v44 = vpop.eup %3490 }
 0x533   : > { %v3493_v8 = vpop.eup %3492  ;;  %v1828_v9 = vmul.f32 %v3491_v44, %v3489_v43 }
 0x534   : > { %v1827_v11 = vmul.f32 %v3493_v8, %v4022_v7  ;;  %v3495_v12 = vpop.eup %3494  ;;  %v3164_v7 = vld [vmem:[%s2885_s24 + $0xa0] sm:$0xff] }
 0x536   : > { %v4066_v33 = vadd.f32 %v1828_v9, %v1827_v11 }
 0x538   : > { %3496 = vtanh.f32 %v4066_v33 }
 0x542   : > { %v3497_v13 = vpop.eup %3496 }
 0x543   : > { %v1831_v14 = vmul.f32 %v3497_v13, %v3495_v12 }
 0x545   : > { %1834 = vst [vmem:[%s1833_s22] sm:$0xff] %v1831_v14  ;;  %v1876_v15 = vpack.c.bf16 %v1831_v14, %v1831_v14 }
 0x547   : > { %2070 = vmatmul.mubr.bf16.vlgmr.msra.gmra.mrb[20].mxu0 %v1876_v15  ;;  %2111 = vmatmul.mubr.bf16.vlgmr.msra.gmra.mrb[20].mxu1 %v1876_v15 }
 0x548   : > { %2353 = vmatpush1.bf16.msra.mxu0 %v3896_v47  ;;  %2394 = vmatpush1.bf16.msra.mxu1 %v3899_v48 }
 0x549   : > { %2354 = vmatprep.subr.bf16.mxu0 %v3906_v49  ;;  %2395 = vmatprep.subr.bf16.mxu1 %v3909_v50 }
 0x54a   : > { %2384 = vmatprep.mubr.bf16.mxu0 %v3570_v0  ;;  %2425 = vmatprep.mubr.bf16.mxu1 %v3570_v0 }
 0x54c   : > { %2355 = vmatpush1.bf16.msra.mxu0 %v3912_v51  ;;  %2396 = vmatpush1.bf16.msra.mxu1 %v3915_v1 }
 0x54d   : > { %2356 = vmatprep.subr.bf16.mxu0 %v3922_v6  ;;  %2397 = vmatprep.subr.bf16.mxu1 %v3925_v52 }
 0x550   : > { %2357 = vmatpush1.bf16.msra.mxu0 %v3928_v53  ;;  %2398 = vmatpush1.bf16.msra.mxu1 %v3931_v54 }
 0x551   : > { %2358 = vmatprep.subr.bf16.mxu0 %v3938_v55  ;;  %2399 = vmatprep.subr.bf16.mxu1 %v3941_v56 }
 0x554   : > { %2359 = vmatpush1.bf16.msra.mxu0 %v3944_v57  ;;  %2400 = vmatpush1.bf16.msra.mxu1 %v3947_v58 }
 0x555   : > { %2360 = vmatprep.subr.bf16.mxu0 %v3954_v59  ;;  %2401 = vmatprep.subr.bf16.mxu1 %v3957_v60 }
 0x558   : > { %2361 = vmatpush1.bf16.msra.mxu0 %v3960_v61  ;;  %2402 = vmatpush1.bf16.msra.mxu1 %v3963_v62 }
 0x559   : > { %2362 = vmatprep.subr.bf16.mxu0 %v3968_v63  ;;  %2403 = vmatprep.subr.bf16.mxu1 %v3979_v36 }
 0x55c   : > { %2363 = vmatpush1.bf16.msra.mxu0 %v3973_v34  ;;  %2404 = vmatpush1.bf16.msra.mxu1 %v3976_v35 }
 0x55d   : > { %2364 = vmatprep.subr.bf16.mxu0 %v3983_v37  ;;  %2405 = vmatprep.subr.bf16.mxu1 %v3986_v38 }
 0x560   : > { %2365 = vmatpush1.bf16.msra.mxu0 %v3992_v39  ;;  %2406 = vmatpush1.bf16.msra.mxu1 %v3995_v40 }
 0x561   : > { %2366 = vmatprep.subr.bf16.mxu0 %v4000_v2  ;;  %2407 = vmatprep.subr.bf16.mxu1 %v4003_v3 }
 0x564   : > { %2367 = vmatpush1.bf16.msra.mxu0 %v4008_v4  ;;  %2408 = vmatpush1.bf16.msra.mxu1 %v4011_v5 }
 0x565   : > { %2667 = vmatprep.subr.bf16.mxu0 %v3890_v45  ;;  %2708 = vmatprep.subr.bf16.mxu1 %v3893_v46  ;;  %v3167_v45 = vld [vmem:[%s2885_s24 + $0xb8] sm:$0xff] }
 0x61a   : > { %v2071_v17 = vpop.f32.mrb[20].mxu0  ;;  %v2112_v18 = vpop.f32.mrb[20].mxu1 }
 0x61b   : > { %v2119_v19 = vadd.f32 %v3164_v7, %v2071_v17  ;;  %v2073_v20 = vpop.f32.mrb[21].mxu0  ;;  %v2114_v21 = vpop.f32.mrb[21].mxu1  ;;  %v2121_v31 = vadd.f32 %v3166_v29, %v2112_v18 }
 0x61c   : > { %v2120_v22 = vadd.f32 %v3165_v16, %v2073_v20  ;;  %v2075_v23 = vpop.f32.mrb[22].mxu0  ;;  %v2116_v24 = vpop.f32.mrb[22].mxu1  ;;  %v2122_v46 = vadd.f32 %v3167_v45, %v2114_v21  ;;  %v3248_v21 = vld [vmem:[%s2901_s5 + $0xe0] sm:$0xff] }
 0x61d   : > { %v3200_v25 = vmul.f32 -1.442695, %v2119_v19  ;;  %v2076_v26 = vpop.f32.mrb[23].mxu0  ;;  %v2117_v27 = vpop.f32.mrb[23].mxu1 }
 0x61e   : > { %v3201_v28 = vmul.f32 -1.442695, %v2120_v22  ;;  %v3202_v30 = vmul.f32 -1.442695, %v2122_v46  ;;  %v3249_v22 = vld [vmem:[%s2901_s5 + $0xe8] sm:$0xff] }
 0x61f   : > { %3498 = vpow2.f32 %v3200_v25 }
 0x620   : > { %3500 = vpow2.f32 %v3201_v28 }
 0x621   : > { %3502 = vpow2.f32 %v3202_v30 }
 0x622   : > { %3504 = vtanh.f32 %v2121_v31 }
 0x629   : > { %v3499_v32 = vpop.eup %3498 }
 0x62a   : > { %v3501_v41 = vpop.eup %3500  ;;  %v2126_v42 = vadd.f32 1.0, %v3499_v32 }
 0x62b   : > { %v2132_v43 = vadd.f32 1.0, %v3501_v41  ;;  %v3503_v44 = vpop.eup %3502  ;;  %v3251_v41 = vld [vmem:[%s2901_s5 + $0xf8] sm:$0xff] }
 0x62c   : > { %3506 = vrcp.f32 %v2126_v42  ;;  %v3505_v8 = vpop.eup %3504  ;;  %v2139_v12 = vadd.f32 1.0, %v3503_v44 }
 0x62d   : > { %3508 = vrcp.f32 %v2132_v43  ;;  %v3250_v43 = vld [vmem:[%s2901_s5 + $0xf0] sm:$0xff] }
 0x62e   : > { %3510 = vrcp.f32 %v2139_v12 }
 0x636   : > { %v3507_v9 = vpop.eup %3506 }
 0x637   : > { %v3509_v10 = vpop.eup %3508  ;;  %v2143_v11 = vmul.f32 %v3507_v9, %v3505_v8 }
 0x638   : > { %v2142_v13 = vmul.f32 %v3509_v10, %v4066_v33  ;;  %v3511_v15 = vpop.eup %3510 }
 0x63a   : > { %v4109_v14 = vadd.f32 %v2143_v11, %v2142_v13 }
 0x63c   : > { %3512 = vtanh.f32 %v4109_v14 }
 0x646   : > { %v3513_v7 = vpop.eup %3512 }
 0x647   : > { %v2146_v16 = vmul.f32 %v3513_v7, %v3511_v15 }
 0x649   : > { %3204 = vst [vmem:[%s2889_s26 + $0x28] sm:$0xff] %v2146_v16  ;;  %v2191_v17 = vpack.c.bf16 %v2146_v16, %v2146_v16 }
 0x64b   : > { %2385 = vmatmul.mubr.bf16.vlgmr.msra.gmra.mrb[24].mxu0 %v2191_v17  ;;  %2426 = vmatmul.mubr.bf16.vlgmr.msra.gmra.mrb[24].mxu1 %v2191_v17 }
 0x64c   : > { %2668 = vmatpush1.bf16.msra.mxu0 %v3896_v47  ;;  %2709 = vmatpush1.bf16.msra.mxu1 %v3899_v48  ;;  %v3207_v47 = vld [vmem:[%s2893_s29 + $0xc8] sm:$0xff] }
 0x64d   : > { %2669 = vmatprep.subr.bf16.mxu0 %v3906_v49  ;;  %2710 = vmatprep.subr.bf16.mxu1 %v3909_v50 }
 0x64e   : > { %2699 = vmatprep.mubr.bf16.mxu0 %v3570_v0  ;;  %2740 = vmatprep.mubr.bf16.mxu1 %v3570_v0  ;;  %v3206_v0 = vld [vmem:[%s2893_s29 + $0xc0] sm:$0xff] }
 0x650   : > { %2670 = vmatpush1.bf16.msra.mxu0 %v3912_v51  ;;  %2711 = vmatpush1.bf16.msra.mxu1 %v3915_v1 }
 0x651   : > { %2671 = vmatprep.subr.bf16.mxu0 %v3922_v6  ;;  %2712 = vmatprep.subr.bf16.mxu1 %v3925_v52 }
 0x654   : > { %2672 = vmatpush1.bf16.msra.mxu0 %v3928_v53  ;;  %2713 = vmatpush1.bf16.msra.mxu1 %v3931_v54 }
 0x655   : > { %2673 = vmatprep.subr.bf16.mxu0 %v3938_v55  ;;  %2714 = vmatprep.subr.bf16.mxu1 %v3941_v56 }
 0x658   : > { %2674 = vmatpush1.bf16.msra.mxu0 %v3944_v57  ;;  %2715 = vmatpush1.bf16.msra.mxu1 %v3947_v58  ;;  %v3209_v58 = vld [vmem:[%s2893_s29 + $0xd8] sm:$0xff] }
 0x659   : > { %2675 = vmatprep.subr.bf16.mxu0 %v3954_v59  ;;  %2716 = vmatprep.subr.bf16.mxu1 %v3957_v60  ;;  %v3208_v60 = vld [vmem:[%s2893_s29 + $0xd0] sm:$0xff] }
 0x65c   : > { %2676 = vmatpush1.bf16.msra.mxu0 %v3960_v61  ;;  %2717 = vmatpush1.bf16.msra.mxu1 %v3963_v62 }
 0x65d   : > { %2677 = vmatprep.subr.bf16.mxu0 %v3968_v63  ;;  %2718 = vmatprep.subr.bf16.mxu1 %v3979_v36 }
 0x660   : > { %2678 = vmatpush1.bf16.msra.mxu0 %v3973_v34  ;;  %2719 = vmatpush1.bf16.msra.mxu1 %v3976_v35 }
 0x661   : > { %2679 = vmatprep.subr.bf16.mxu0 %v3983_v37  ;;  %2720 = vmatprep.subr.bf16.mxu1 %v3986_v38 }
 0x664   : > { %2680 = vmatpush1.bf16.msra.mxu0 %v3992_v39  ;;  %2721 = vmatpush1.bf16.msra.mxu1 %v3995_v40 }
 0x665   : > { %2681 = vmatprep.subr.bf16.mxu0 %v4000_v2  ;;  %2722 = vmatprep.subr.bf16.mxu1 %v4003_v3 }
 0x668   : > { %2682 = vmatpush1.bf16.msra.mxu0 %v4008_v4  ;;  %2723 = vmatpush1.bf16.msra.mxu1 %v4011_v5 }
 0x71e   : > { %v2386_v48 = vpop.f32.mrb[24].mxu0  ;;  %v2427_v49 = vpop.f32.mrb[24].mxu1 }
 0x71f   : > { %v2434_v50 = vadd.f32 %v3206_v0, %v2386_v48  ;;  %v2388_v51 = vpop.f32.mrb[25].mxu0  ;;  %v2429_v1 = vpop.f32.mrb[25].mxu1  ;;  %v2436_v62 = vadd.f32 %v3208_v60, %v2427_v49 }
 0x720   : > { %v2435_v6 = vadd.f32 %v3207_v47, %v2388_v51  ;;  %v2390_v52 = vpop.f32.mrb[26].mxu0  ;;  %v2431_v53 = vpop.f32.mrb[26].mxu1  ;;  %v2437_v59 = vadd.f32 %v3209_v58, %v2429_v1 }
 0x721   : > { %v3242_v54 = vmul.f32 -1.442695, %v2434_v50  ;;  %v2391_v55 = vpop.f32.mrb[27].mxu0  ;;  %v2432_v56 = vpop.f32.mrb[27].mxu1 }
 0x722   : > { %v3243_v57 = vmul.f32 -1.442695, %v2435_v6  ;;  %v3244_v61 = vmul.f32 -1.442695, %v2437_v59 }
 0x723   : > { %3514 = vpow2.f32 %v3242_v54 }
 0x724   : > { %3516 = vpow2.f32 %v3243_v57 }
 0x725   : > { %3518 = vpow2.f32 %v3244_v61 }
 0x726   : > { %3520 = vtanh.f32 %v2436_v62 }
 0x72d   : > { %v3515_v63 = vpop.eup %3514 }
 0x72e   : > { %v3517_v34 = vpop.eup %3516  ;;  %v2441_v35 = vadd.f32 1.0, %v3515_v63 }
 0x72f   : > { %v2447_v36 = vadd.f32 1.0, %v3517_v34  ;;  %v3519_v37 = vpop.eup %3518 }
 0x730   : > { %3522 = vrcp.f32 %v2441_v35  ;;  %v3521_v38 = vpop.eup %3520  ;;  %v2454_v3 = vadd.f32 1.0, %v3519_v37 }
 0x731   : > { %3524 = vrcp.f32 %v2447_v36 }
 0x732   : > { %3526 = vrcp.f32 %v2454_v3 }
 0x73a   : > { %v3523_v39 = vpop.eup %3522 }
 0x73b   : > { %v3525_v40 = vpop.eup %3524  ;;  %v2458_v2 = vmul.f32 %v3523_v39, %v3521_v38 }
 0x73c   : > { %v2457_v4 = vmul.f32 %v3525_v40, %v4109_v14  ;;  %v3527_v33 = vpop.eup %3526 }
 0x73e   : > { %v2459_v5 = vadd.f32 %v2458_v2, %v2457_v4 }
 0x740   : > { %3528 = vtanh.f32 %v2459_v5 }
 0x74a   : > { %v3529_v18 = vpop.eup %3528 }
 0x74b   : > { %v2461_v19 = vmul.f32 %v3529_v18, %v3527_v33 }
 0x74d   : > { %3246 = vst [vmem:[%s2897_s3 + $0x30] sm:$0xff] %v2461_v19  ;;  %v2506_v20 = vpack.c.bf16 %v2461_v19, %v2461_v19 }
 0x74f   : > { %2700 = vmatmul.mubr.bf16.vlgmr.msra.gmra.mrb[28].mxu0 %v2506_v20  ;;  %2741 = vmatmul.mubr.bf16.vlgmr.msra.gmra.mrb[28].mxu1 %v2506_v20 }
 0x822   : > { %v2701_v23 = vpop.f32.mrb[28].mxu0  ;;  %v2742_v24 = vpop.f32.mrb[28].mxu1 }
 0x823   : > { %v2749_v25 = vadd.f32 %v3248_v21, %v2701_v23  ;;  %v2703_v26 = vpop.f32.mrb[29].mxu0  ;;  %v2744_v27 = vpop.f32.mrb[29].mxu1  ;;  %v2751_v8 = vadd.f32 %v3250_v43, %v2742_v24 }
 0x824   : > { %v2750_v28 = vadd.f32 %v3249_v22, %v2703_v26  ;;  %v2705_v45 = vpop.f32.mrb[30].mxu0  ;;  %v2746_v46 = vpop.f32.mrb[30].mxu1  ;;  %v2752_v42 = vadd.f32 %v3251_v41, %v2744_v27 }
 0x825   : > { %v3284_v29 = vmul.f32 -1.442695, %v2749_v25  ;;  %v2706_v30 = vpop.f32.mrb[31].mxu0  ;;  %v2747_v31 = vpop.f32.mrb[31].mxu1 }
 0x826   : > { %v3285_v32 = vmul.f32 -1.442695, %v2750_v28  ;;  %v3286_v44 = vmul.f32 -1.442695, %v2752_v42 }
 0x827   : > { %3530 = vpow2.f32 %v3284_v29 }
 0x828   : > { %3532 = vpow2.f32 %v3285_v32 }
 0x829   : > { %3534 = vpow2.f32 %v3286_v44 }
 0x82a   : > { %3536 = vtanh.f32 %v2751_v8 }
 0x831   : > { %v3531_v9 = vpop.eup %3530 }
 0x832   : > { %v3533_v10 = vpop.eup %3532  ;;  %v2756_v11 = vadd.f32 1.0, %v3531_v9 }
 0x833   : > { %v2762_v12 = vadd.f32 1.0, %v3533_v10  ;;  %v3535_v13 = vpop.eup %3534 }
 0x834   : > { %3538 = vrcp.f32 %v2756_v11  ;;  %v3537_v14 = vpop.eup %3536  ;;  %v2769_v17 = vadd.f32 1.0, %v3535_v13 }
 0x835   : > { %3540 = vrcp.f32 %v2762_v12 }
 0x836   : > { %3542 = vrcp.f32 %v2769_v17 }
 0x83e   : > { %v3539_v15 = vpop.eup %3538 }
 0x83f   : > { %v3541_v7 = vpop.eup %3540  ;;  %v2773_v16 = vmul.f32 %v3539_v15, %v3537_v14 }
 0x840   : > { %v2772_v0 = vmul.f32 %v3541_v7, %v2459_v5  ;;  %v3543_v48 = vpop.eup %3542 }
 0x842   : > { %v2774_v47 = vadd.f32 %v2773_v16, %v2772_v0 }
 0x844   : > { %3544 = vtanh.f32 %v2774_v47 }
 0x84e   : > { %v3545_v49 = vpop.eup %3544 }
 0x84f   : > { %v2776_v50 = vmul.f32 %v3545_v49, %v3543_v48 }
 0x851   : > { %3288 = vst [vmem:[%s2905_s6 + $0x38] sm:$0xff] %v2776_v50 }
 0x852 PF: > { %s12_s11 = sadd.s32 1, %s3568_s11   ;;  %s4167_s9 = smov %s3564_s10 }
 0x853   : > { %p9_p5 = scmp.ge.s32.totalorder %s12_s11, 4   ;;  %s4168_s10 = smov %s4170_s12 }
 0x855   :  { %11 = sbr.rel (!%p9_p5) target bundleno = 2 (0x2), region = 81 }

</bundles_post_ra>
